<compile_context>
chip_gen: v7x
topology: tpu7x:2x2x1
jax: 0.10.0
libtpu: 0.0.40
codegen_flags: <defaults>
</compile_context>

<pallas_src>
import jax
import jax.numpy as jnp
from jax.experimental import pallas as pl
from jax.experimental.pallas import tpu as pltpu

LANE = 128
NEG_INF = -1e30


def _round_up(x, m):
    return ((x + m - 1) // m) * m


# ----------------------------------------------------------------------------
# Kernel: one decode step per grid iteration; weights stay VMEM-resident.
# ----------------------------------------------------------------------------
def attn_decoder_kernel(
        tok_ref,                                   # (T,) int32 scalar prefetch (SMEM)
        emb_ref, h0_ref, enc_ref,                  # gathered emb row / init hidden / enc
        wae_ref, wah_ref, ba_ref,                  # attention (split halves)
        wce_ref, wcc_ref, bc_ref,                  # attn_combine (split halves)
        wih_ref, bih_ref, whh_ref, bhh_ref,        # GRU gates (un-fused)
        wout_ref, bout_ref,                        # output projection
        logp_ref, hnew_ref, attw_ref,              # outputs
        h_scr):                                    # VMEM scratch: carried hidden (f32)
    del tok_ref  # consumed by the embedding gather index_map
    hp = h0_ref.shape[1]
    t = pl.program_id(0)

    @pl.when(t == 0)
    def _():
        h_scr[...] = h0_ref[...]

    h = h_scr[...]                                 # (1, HP) f32
    h_bf = h.astype(jnp.bfloat16)
    emb = emb_ref[0]                               # (1, HP) bf16 (single gathered row)

    # TODO(synk): dropout on the embedding (training=True) not applied.

    # ---- attention scores (split matmuls instead of concat) ----------------
    att = (jnp.dot(emb, wae_ref[...], preferred_element_type=jnp.float32)
           + jnp.dot(h_bf, wah_ref[...], preferred_element_type=jnp.float32)
           + ba_ref[...])                          # (1, LP) f32, padded lanes ~ -1e30
    att_m = jnp.max(att, axis=1, keepdims=True)
    att_e = jnp.exp(att - att_m)                   # padded lanes -> 0
    attw = att_e / jnp.sum(att_e, axis=1, keepdims=True)
    attw_ref[0] = attw

    # ---- context = attw @ encoder_out ---------------------------------------
    ctx = jnp.dot(attw.astype(jnp.bfloat16), enc_ref[...],
                  preferred_element_type=jnp.float32)          # (1, HP) f32

    # ---- attn_combine + ReLU -------------------------------------------------
    comb = (jnp.dot(emb, wce_ref[...], preferred_element_type=jnp.float32)
            + jnp.dot(ctx.astype(jnp.bfloat16), wcc_ref[...],
                      preferred_element_type=jnp.float32)
            + bc_ref[...])                         # (1, HP) f32
    x_bf = jnp.maximum(comb, 0.0).astype(jnp.bfloat16)

    # ---- 1-step GRU (un-fused gi / gh matmuls) -------------------------------
    gi = jnp.dot(x_bf, wih_ref[...], preferred_element_type=jnp.float32) + bih_ref[...]
    gh = jnp.dot(h_bf, whh_ref[...], preferred_element_type=jnp.float32) + bhh_ref[...]
    r = jax.nn.sigmoid(gi[:, 0:hp] + gh[:, 0:hp])
    z = jax.nn.sigmoid(gi[:, hp:2 * hp] + gh[:, hp:2 * hp])
    n = jnp.tanh(gi[:, 2 * hp:3 * hp] + r * gh[:, 2 * hp:3 * hp])
    h_new = (1.0 - z) * n + z * h                  # (1, HP) f32 (padded lanes stay 0)
    h_scr[...] = h_new
    hnew_ref[...] = h_new

    # ---- output projection + log_softmax -------------------------------------
    logits = (jnp.dot(h_new.astype(jnp.bfloat16), wout_ref[...],
                      preferred_element_type=jnp.float32) + bout_ref[...])  # (1, OP)
    m = jnp.max(logits, axis=1, keepdims=True)
    sh = logits - m
    lse = jnp.log(jnp.sum(jnp.exp(sh), axis=1, keepdims=True))
    logp_ref[0] = sh - lse


# ----------------------------------------------------------------------------
# Host-side parameter packing (one time): transpose, split, pad, cast to bf16.
# ----------------------------------------------------------------------------
def pack_params(raw, H, O, L):
    HP = _round_up(H, LANE)
    OP = _round_up(O, LANE)
    LP = _round_up(L, LANE)
    bf16, f32 = jnp.bfloat16, jnp.float32

    # Embedding table: (O, 1, HP) bf16 so one row is gathered per step.
    emb = jnp.zeros((O, 1, HP), bf16).at[:, 0, :H].set(raw["embedding"].astype(bf16))

    # attn: Linear(2H -> L), split into emb-half and hidden-half.
    wat = raw["W_attn"].T                                     # (2H, L)
    w_attn_e = jnp.zeros((HP, LP), bf16).at[:H, :L].set(wat[:H].astype(bf16))
    w_attn_h = jnp.zeros((HP, LP), bf16).at[:H, :L].set(wat[H:].astype(bf16))
    b_attn = jnp.full((1, LP), NEG_INF, f32).at[0, :L].set(raw["b_attn"])

    # attn_combine: Linear(2H -> H), split into emb-half and context-half.
    wct = raw["W_comb"].T                                     # (2H, H)
    w_comb_e = jnp.zeros((HP, HP), bf16).at[:H, :H].set(wct[:H].astype(bf16))
    w_comb_c = jnp.zeros((HP, HP), bf16).at[:H, :H].set(wct[H:].astype(bf16))
    b_comb = jnp.zeros((1, HP), f32).at[0, :H].set(raw["b_comb"])

    # GRU: each gate gets its own HP-lane chunk (128-lane aligned slices).
    def pad_gate_w(w):                                        # (3H, H) -> (HP, 3HP)
        wt = w.T.astype(bf16)                                 # (H, 3H)
        out = jnp.zeros((HP, 3 * HP), bf16)
        for g in range(3):
            out = out.at[:H, g * HP:g * HP + H].set(wt[:, g * H:(g + 1) * H])
        return out

    def pad_gate_b(b):                                        # (3H,) -> (1, 3HP), f32
        out = jnp.zeros((1, 3 * HP), f32)
        for g in range(3):
            out = out.at[0, g * HP:g * HP + H].set(b[g * H:(g + 1) * H])
        return out

    w_ih, b_ih = pad_gate_w(raw["W_ih"]), pad_gate_b(raw["b_ih"])
    w_hh, b_hh = pad_gate_w(raw["W_hh"]), pad_gate_b(raw["b_hh"])

    # out: Linear(H -> O); padded vocab lanes forced to -inf via the f32 bias.
    w_out = jnp.zeros((HP, OP), bf16).at[:H, :O].set(raw["W_out"].T.astype(bf16))
    b_out = jnp.full((1, OP), NEG_INF, f32).at[0, :O].set(raw["b_out"])

    return dict(emb=emb, w_attn_e=w_attn_e, w_attn_h=w_attn_h, b_attn=b_attn,
                w_comb_e=w_comb_e, w_comb_c=w_comb_c, b_comb=b_comb,
                w_ih=w_ih, b_ih=b_ih, w_hh=w_hh, b_hh=b_hh,
                w_out=w_out, b_out=b_out, HP=HP, OP=OP, LP=LP)


# ----------------------------------------------------------------------------
# Forward wrapper (eval mode). tokens: (T,) int32 teacher-forced ids.
# ----------------------------------------------------------------------------
def attn_decoder_forward(packed, tokens, hidden, encoder_out, H, O, L):
    """Returns (log_probs (T,O), new_hidden (1,1,H), atten_weights (T,L))."""
    HP, OP, LP = packed["HP"], packed["OP"], packed["LP"]
    tokens = jnp.asarray(tokens, jnp.int32).reshape(-1)
    T = int(tokens.shape[0])

    h_p = jnp.zeros((1, HP), jnp.float32).at[0, :H].set(hidden.reshape(H))
    enc_p = jnp.zeros((LP, HP), jnp.bfloat16).at[:L, :H].set(
        encoder_out.astype(jnp.bfloat16))

    def resident(shape):                     # VMEM-resident across all steps
        nd = len(shape)
        return pl.BlockSpec(shape, lambda t, tok: (0,) * nd)

    in_specs = [
        # embedding: gather exactly one row per step (data-dependent index_map)
        pl.BlockSpec((1, 1, HP), lambda t, tok: (tok[t], 0, 0)),
        resident((1, HP)),                   # h0
        resident((LP, HP)),                  # encoder_out
        resident((HP, LP)), resident((HP, LP)), resident((1, LP)),      # attn
        resident((HP, HP)), resident((HP, HP)), resident((1, HP)),      # combine
        resident((HP, 3 * HP)), resident((1, 3 * HP)),                  # GRU ih
        resident((HP, 3 * HP)), resident((1, 3 * HP)),                  # GRU hh
        resident((HP, OP)), resident((1, OP)),                          # out proj
    ]
    out_specs = (
        pl.BlockSpec((1, 1, OP), lambda t, tok: (t, 0, 0)),   # per-step log-probs
        pl.BlockSpec((1, HP), lambda t, tok: (0, 0)),         # final hidden
        pl.BlockSpec((1, 1, LP), lambda t, tok: (t, 0, 0)),   # per-step attn weights
    )
    out_shape = (jax.ShapeDtypeStruct((T, 1, OP), jnp.float32),
                 jax.ShapeDtypeStruct((1, HP), jnp.float32),
                 jax.ShapeDtypeStruct((T, 1, LP), jnp.float32))

    operands = (packed["emb"], h_p, enc_p,
                packed["w_attn_e"], packed["w_attn_h"], packed["b_attn"],
                packed["w_comb_e"], packed["w_comb_c"], packed["b_comb"],
                packed["w_ih"], packed["b_ih"], packed["w_hh"], packed["b_hh"],
                packed["w_out"], packed["b_out"])

    # Cost estimate + VMEM budget sized from actual resident buffers.
    in_bytes = int(sum(o.size * o.dtype.itemsize for o in operands)) + 4 * T
    out_bytes = 4 * (T * OP + HP + T * LP)
    flops_step = 6 * HP * LP + 16 * HP * HP + 2 * HP * OP
    cost = pl.CostEstimate(flops=int(T * flops_step),
                           transcendentals=int(T * (LP + OP + 3 * HP + 8)),
                           bytes_accessed=int(in_bytes + out_bytes))
    vmem_limit = min(2 * in_bytes + (8 << 20), 96 << 20)

    grid_spec = pltpu.PrefetchScalarGridSpec(
        num_scalar_prefetch=1,
        grid=(T,),
        in_specs=in_specs,
        out_specs=out_specs,
        scratch_shapes=[pltpu.VMEM((1, HP), jnp.float32)],
    )

    logp, h_new, attw = pl.pallas_call(
        attn_decoder_kernel,
        out_shape=out_shape,
        grid_spec=grid_spec,
        compiler_params=pltpu.CompilerParams(
            dimension_semantics=("arbitrary",),
            vmem_limit_bytes=int(vmem_limit)),
        cost_estimate=cost,
    )(tokens, *operands)

    return logp[:, 0, :O], h_new[:, :H].reshape(1, 1, H), attw[:, 0, :L]


# ----------------------------------------------------------------------------
# Pure-JAX reference (PyTorch semantics, eval mode). quantize_bf16=True rounds
# the same operands the kernel rounds (weights + matmul LHS) to bf16 so the
# comparison is apples-to-apples with the bf16-weight kernel.
# ----------------------------------------------------------------------------
def attn_decoder_reference(raw, tokens, hidden, encoder_out, quantize_bf16=True):
    if quantize_bf16:
        q = lambda x: x.astype(jnp.bfloat16).astype(jnp.float32)
    else:
        q = lambda x: x
    H = hidden.shape[-1]
    h = hidden.reshape(1, H)
    logps, attws = [], []
    for t in range(int(tokens.shape[0])):
        emb = q(raw["embedding"][tokens[t]][None, :])
        hq = q(h)
        wat = raw["W_attn"].T
        att = emb @ q(wat[:H]) + hq @ q(wat[H:]) + raw["b_attn"]
        attw = jax.nn.softmax(att, axis=1)
        ctx = q(attw) @ q(encoder_out)
        wct = raw["W_comb"].T
        comb = emb @ q(wct[:H]) + q(ctx) @ q(wct[H:]) + raw["b_comb"]
        x = q(jnp.maximum(comb, 0.0))
        gi = x @ q(raw["W_ih"].T) + raw["b_ih"]
        gh = hq @ q(raw["W_hh"].T) + raw["b_hh"]
        r = jax.nn.sigmoid(gi[:, :H] + gh[:, :H])
        z = jax.nn.sigmoid(gi[:, H:2 * H] + gh[:, H:2 * H])
        n = jnp.tanh(gi[:, 2 * H:] + r * gh[:, 2 * H:])
        h = (1.0 - z) * n + z * h
        logits = q(h) @ q(raw["W_out"].T) + raw["b_out"]
        logps.append(jax.nn.log_softmax(logits, axis=1))
        attws.append(attw)
    return (jnp.concatenate(logps, axis=0), h.reshape(1, 1, H),
            jnp.concatenate(attws, axis=0))


def init_raw_params(key, H, O, L):
    ks = jax.random.split(key, 11)
    s1 = 1.0 / (H ** 0.5)
    s2 = 1.0 / ((2 * H) ** 0.5)
    u = lambda k, shape, lim: jax.random.uniform(k, shape, jnp.float32, -lim, lim)
    return {
        "embedding": jax.random.normal(ks[0], (O, H), jnp.float32),
        "W_attn": u(ks[1], (L, 2 * H), s2), "b_attn": u(ks[2], (L,), s2),
        "W_comb": u(ks[3], (H, 2 * H), s2), "b_comb": u(ks[4], (H,), s2),
        "W_ih": u(ks[5], (3 * H, H), s1), "W_hh": u(ks[6], (3 * H, H), s1),
        "b_ih": u(ks[7], (3 * H,), s1), "b_hh": u(ks[8], (3 * H,), s1),
        "W_out": u(ks[9], (O, H), s1), "b_out": u(ks[10], (O,), s1),
    }


if __name__ == "__main__":
    hidden_size, output_size, max_length = 32, 16, 10

    key = jax.random.PRNGKey(0)
    pkey, hkey, ekey = jax.random.split(key, 3)
    raw = init_raw_params(pkey, hidden_size, output_size, max_length)
    packed = pack_params(raw, hidden_size, output_size, max_length)

    hidden = jax.random.normal(hkey, (1, 1, hidden_size), jnp.float32)
    encoder_out = jax.random.normal(ekey, (max_length, hidden_size), jnp.float32)

    # --- single decode step: exactly the module's forward -------------------
    tok1 = jnp.array([3], jnp.int32)
    logp1, h1, attw1 = attn_decoder_forward(
        packed, tok1, hidden, encoder_out, hidden_size, output_size, max_length)
    jax.block_until_ready((logp1, h1, attw1))

    assert logp1.shape == (1, output_size)
    assert h1.shape == (1, 1, hidden_size)
    assert attw1.shape == (1, max_length)
    assert jnp.allclose(jnp.sum(jnp.exp(logp1), axis=1), 1.0, atol=1e-3)
    assert jnp.allclose(jnp.sum(attw1, axis=1), 1.0, atol=1e-3)

    r_logp, r_h, r_attw = attn_decoder_reference(raw, tok1, hidden, encoder_out,
                                                 quantize_bf16=True)
    assert jnp.allclose(logp1, r_logp, atol=5e-3, rtol=5e-3)
    assert jnp.allclose(h1, r_h, atol=5e-3, rtol=5e-3)
    assert jnp.allclose(attw1, r_attw, atol=5e-3, rtol=5e-3)

    f_logp, f_h, f_attw = attn_decoder_reference(raw, tok1, hidden, encoder_out,
                                                 quantize_bf16=False)
    assert jnp.allclose(logp1, f_logp, atol=1e-1, rtol=1e-1)   # bf16-weight tolerance
    assert jnp.allclose(h1, f_h, atol=1e-1, rtol=1e-1)

    # --- multi-step teacher-forced decode: weights stay VMEM-resident -------
    toks = jnp.array([3, 7, 1, 12], jnp.int32)
    logp4, h4, attw4 = attn_decoder_forward(
        packed, toks, hidden, encoder_out, hidden_size, output_size, max_length)
    jax.block_until_ready((logp4, h4, attw4))

    r_logp4, r_h4, r_attw4 = attn_decoder_reference(raw, toks, hidden, encoder_out,
                                                    quantize_bf16=True)
    assert logp4.shape == (4, output_size)
    assert attw4.shape == (4, max_length)
    assert jnp.allclose(logp4, r_logp4, atol=5e-3, rtol=5e-3)
    assert jnp.allclose(h4, r_h4, atol=5e-3, rtol=5e-3)
    assert jnp.allclose(attw4, r_attw4, atol=5e-3, rtol=5e-3)

    print("KERNEL_OK")
</pallas_src>

<mosaic_0001>
module attributes {stable_mosaic.version = 11 : i64} {
  func.func @attn_decoder_kernel(%arg0: i32, %arg1: memref<1xi32, #tpu.memory_space<smem>>, %arg2: memref<1x1x128xbf16, #tpu.memory_space<vmem>>, %arg3: memref<1x128xf32, #tpu.memory_space<vmem>>, %arg4: memref<128x128xbf16, #tpu.memory_space<vmem>>, %arg5: memref<128x128xbf16, #tpu.memory_space<vmem>>, %arg6: memref<128x128xbf16, #tpu.memory_space<vmem>>, %arg7: memref<1x128xf32, #tpu.memory_space<vmem>>, %arg8: memref<128x128xbf16, #tpu.memory_space<vmem>>, %arg9: memref<128x128xbf16, #tpu.memory_space<vmem>>, %arg10: memref<1x128xf32, #tpu.memory_space<vmem>>, %arg11: memref<128x384xbf16, #tpu.memory_space<vmem>>, %arg12: memref<1x384xf32, #tpu.memory_space<vmem>>, %arg13: memref<128x384xbf16, #tpu.memory_space<vmem>>, %arg14: memref<1x384xf32, #tpu.memory_space<vmem>>, %arg15: memref<128x128xbf16, #tpu.memory_space<vmem>>, %arg16: memref<1x128xf32, #tpu.memory_space<vmem>>, %arg17: memref<1x1x128xf32, #tpu.memory_space<vmem>>, %arg18: memref<1x128xf32, #tpu.memory_space<vmem>>, %arg19: memref<1x1x128xf32, #tpu.memory_space<vmem>>, %arg20: memref<1x128xf32, #tpu.memory_space<vmem>>) attributes {dimension_semantics = [#tpu.dimension_semantics<arbitrary>], iteration_bounds = array<i64: 1>, scalar_prefetch = 1 : i64, scratch_operands = 1 : i64, tpu.core_type = #tpu.core_type<tc>, window_params = [{transform_indices = @transform_0, window_bounds = array<i64: 1, 1, 128>}, {pipeline_mode = #tpu.pipeline_mode<synchronous>, transform_indices = @transform_1, window_bounds = array<i64: 1, 128>}, {pipeline_mode = #tpu.pipeline_mode<synchronous>, transform_indices = @transform_2, window_bounds = array<i64: 128, 128>}, {pipeline_mode = #tpu.pipeline_mode<synchronous>, transform_indices = @transform_3, window_bounds = array<i64: 128, 128>}, {pipeline_mode = #tpu.pipeline_mode<synchronous>, transform_indices = @transform_4, window_bounds = array<i64: 128, 128>}, {pipeline_mode = #tpu.pipeline_mode<synchronous>, transform_indices = @transform_5, window_bounds = array<i64: 1, 128>}, {pipeline_mode = #tpu.pipeline_mode<synchronous>, transform_indices = @transform_6, window_bounds = array<i64: 128, 128>}, {pipeline_mode = #tpu.pipeline_mode<synchronous>, transform_indices = @transform_7, window_bounds = array<i64: 128, 128>}, {pipeline_mode = #tpu.pipeline_mode<synchronous>, transform_indices = @transform_8, window_bounds = array<i64: 1, 128>}, {pipeline_mode = #tpu.pipeline_mode<synchronous>, transform_indices = @transform_9, window_bounds = array<i64: 128, 384>}, {pipeline_mode = #tpu.pipeline_mode<synchronous>, transform_indices = @transform_10, window_bounds = array<i64: 1, 384>}, {pipeline_mode = #tpu.pipeline_mode<synchronous>, transform_indices = @transform_11, window_bounds = array<i64: 128, 384>}, {pipeline_mode = #tpu.pipeline_mode<synchronous>, transform_indices = @transform_12, window_bounds = array<i64: 1, 384>}, {pipeline_mode = #tpu.pipeline_mode<synchronous>, transform_indices = @transform_13, window_bounds = array<i64: 128, 128>}, {pipeline_mode = #tpu.pipeline_mode<synchronous>, transform_indices = @transform_14, window_bounds = array<i64: 1, 128>}, {transform_indices = @transform_15, window_bounds = array<i64: 1, 1, 128>}, {pipeline_mode = #tpu.pipeline_mode<synchronous>, transform_indices = @transform_16, window_bounds = array<i64: 1, 128>}, {transform_indices = @transform_17, window_bounds = array<i64: 1, 1, 128>}]} {
    %c0_i32 = arith.constant 0 : i32
    %0 = arith.cmpi eq, %arg0, %c0_i32 : i32
    %1 = arith.extui %0 : i1 to i32
    %c0_i32_0 = arith.constant 0 : i32
    %2 = arith.cmpi ne, %1, %c0_i32_0 : i32
    scf.if %2 {
      %c0_56 = arith.constant 0 : index
      %c0_57 = arith.constant 0 : index
      %94 = vector.load %arg3[%c0_56, %c0_57] : memref<1x128xf32, #tpu.memory_space<vmem>>, vector<1x128xf32>
      %c0_58 = arith.constant 0 : index
      %c0_59 = arith.constant 0 : index
      %95 = vector.load %arg20[%c0_58, %c0_59] : memref<1x128xf32, #tpu.memory_space<vmem>>, vector<1x128xf32>
      tpu.vector_store %arg20[%c0_58, %c0_59], %94 {strides = array<i32>} : memref<1x128xf32, #tpu.memory_space<vmem>>, vector<1x128xf32>,
    } else {
    }
    %c0 = arith.constant 0 : index
    %c0_1 = arith.constant 0 : index
    %3 = vector.load %arg20[%c0, %c0_1] : memref<1x128xf32, #tpu.memory_space<vmem>>, vector<1x128xf32>
    %4 = arith.truncf %3 : vector<1x128xf32> to vector<1x128xbf16>
    %c0_2 = arith.constant 0 : index
    %c0_3 = arith.constant 0 : index
    %c0_4 = arith.constant 0 : index
    %5 = vector.load %arg2[%c0_2, %c0_3, %c0_4] : memref<1x1x128xbf16, #tpu.memory_space<vmem>>, vector<1x1x128xbf16>
    %6 = vector.shape_cast %5 : vector<1x1x128xbf16> to vector<1x128xbf16>
    %c0_5 = arith.constant 0 : index
    %c0_6 = arith.constant 0 : index
    %7 = vector.load %arg5[%c0_5, %c0_6] : memref<128x128xbf16, #tpu.memory_space<vmem>>, vector<128x128xbf16>
    %cst = arith.constant dense<0.000000e+00> : vector<1x128xf32>
    %8 = tpu.matmul %6, %7, %cst {dimension_numbers = #tpu.dot_dimension_numbers<[1], [0], [0], [1], [0, 0, 1, 1], [], []>} : vector<1x128xbf16>, vector<128x128xbf16>, vector<1x128xf32> -> vector<1x128xf32>
    %c0_7 = arith.constant 0 : index
    %c0_8 = arith.constant 0 : index
    %9 = vector.load %arg6[%c0_7, %c0_8] : memref<128x128xbf16, #tpu.memory_space<vmem>>, vector<128x128xbf16>
    %cst_9 = arith.constant dense<0.000000e+00> : vector<1x128xf32>
    %10 = tpu.matmul %4, %9, %cst_9 {dimension_numbers = #tpu.dot_dimension_numbers<[1], [0], [0], [1], [0, 0, 1, 1], [], []>} : vector<1x128xbf16>, vector<128x128xbf16>, vector<1x128xf32> -> vector<1x128xf32>
    %11 = arith.addf %8, %10 : vector<1x128xf32>
    %c0_10 = arith.constant 0 : index
    %c0_11 = arith.constant 0 : index
    %12 = vector.load %arg7[%c0_10, %c0_11] : memref<1x128xf32, #tpu.memory_space<vmem>>, vector<1x128xf32>
    %13 = arith.addf %11, %12 : vector<1x128xf32>
    %cst_12 = arith.constant dense<0xFF800000> : vector<1xf32>
    %14 = vector.multi_reduction <maximumf>, %13, %cst_12 [1] : vector<1x128xf32> to vector<1xf32>
    %15 = vector.shape_cast %14 : vector<1xf32> to vector<1x1xf32>
    %16 = vector.broadcast %15 : vector<1x1xf32> to vector<1x128xf32>
    %17 = arith.subf %13, %16 : vector<1x128xf32>
    %18 = math.exp %17 : vector<1x128xf32>
    %cst_13 = arith.constant dense<0.000000e+00> : vector<1xf32>
    %19 = vector.multi_reduction <add>, %18, %cst_13 [1] : vector<1x128xf32> to vector<1xf32>
    %20 = vector.shape_cast %19 : vector<1xf32> to vector<1x1xf32>
    %21 = vector.broadcast %20 : vector<1x1xf32> to vector<1x128xf32>
    %22 = arith.divf %18, %21 : vector<1x128xf32>
    %c0_14 = arith.constant 0 : index
    %c0_15 = arith.constant 0 : index
    %c0_16 = arith.constant 0 : index
    %23 = vector.load %arg19[%c0_14, %c0_15, %c0_16] : memref<1x1x128xf32, #tpu.memory_space<vmem>>, vector<1x1x128xf32>
    %24 = vector.shape_cast %23 : vector<1x1x128xf32> to vector<1x128xf32>
    %25 = vector.shape_cast %22 : vector<1x128xf32> to vector<1x1x128xf32>
    tpu.vector_store %arg19[%c0_14, %c0_15, %c0_16], %25 {strides = array<i32>} : memref<1x1x128xf32, #tpu.memory_space<vmem>>, vector<1x1x128xf32>,
    %26 = arith.truncf %22 : vector<1x128xf32> to vector<1x128xbf16>
    %c0_17 = arith.constant 0 : index
    %c0_18 = arith.constant 0 : index
    %27 = vector.load %arg4[%c0_17, %c0_18] : memref<128x128xbf16, #tpu.memory_space<vmem>>, vector<128x128xbf16>
    %cst_19 = arith.constant dense<0.000000e+00> : vector<1x128xf32>
    %28 = tpu.matmul %26, %27, %cst_19 {dimension_numbers = #tpu.dot_dimension_numbers<[1], [0], [0], [1], [0, 0, 1, 1], [], []>} : vector<1x128xbf16>, vector<128x128xbf16>, vector<1x128xf32> -> vector<1x128xf32>
    %c0_20 = arith.constant 0 : index
    %c0_21 = arith.constant 0 : index
    %29 = vector.load %arg8[%c0_20, %c0_21] : memref<128x128xbf16, #tpu.memory_space<vmem>>, vector<128x128xbf16>
    %cst_22 = arith.constant dense<0.000000e+00> : vector<1x128xf32>
    %30 = tpu.matmul %6, %29, %cst_22 {dimension_numbers = #tpu.dot_dimension_numbers<[1], [0], [0], [1], [0, 0, 1, 1], [], []>} : vector<1x128xbf16>, vector<128x128xbf16>, vector<1x128xf32> -> vector<1x128xf32>
    %31 = arith.truncf %28 : vector<1x128xf32> to vector<1x128xbf16>
    %c0_23 = arith.constant 0 : index
    %c0_24 = arith.constant 0 : index
    %32 = vector.load %arg9[%c0_23, %c0_24] : memref<128x128xbf16, #tpu.memory_space<vmem>>, vector<128x128xbf16>
    %cst_25 = arith.constant dense<0.000000e+00> : vector<1x128xf32>
    %33 = tpu.matmul %31, %32, %cst_25 {dimension_numbers = #tpu.dot_dimension_numbers<[1], [0], [0], [1], [0, 0, 1, 1], [], []>} : vector<1x128xbf16>, vector<128x128xbf16>, vector<1x128xf32> -> vector<1x128xf32>
    %34 = arith.addf %30, %33 : vector<1x128xf32>
    %c0_26 = arith.constant 0 : index
    %c0_27 = arith.constant 0 : index
    %35 = vector.load %arg10[%c0_26, %c0_27] : memref<1x128xf32, #tpu.memory_space<vmem>>, vector<1x128xf32>
    %36 = arith.addf %34, %35 : vector<1x128xf32>
    %cst_28 = arith.constant 0.000000e+00 : f32
    %37 = vector.broadcast %cst_28 : f32 to vector<1x128xf32>
    %38 = arith.maximumf %36, %37 : vector<1x128xf32>
    %39 = arith.truncf %38 : vector<1x128xf32> to vector<1x128xbf16>
    %c0_29 = arith.constant 0 : index
    %c0_30 = arith.constant 0 : index
    %40 = vector.load %arg11[%c0_29, %c0_30] : memref<128x384xbf16, #tpu.memory_space<vmem>>, vector<128x384xbf16>
    %cst_31 = arith.constant dense<0.000000e+00> : vector<1x384xf32>
    %41 = tpu.matmul %39, %40, %cst_31 {dimension_numbers = #tpu.dot_dimension_numbers<[1], [0], [0], [1], [0, 0, 1, 1], [], []>} : vector<1x128xbf16>, vector<128x384xbf16>, vector<1x384xf32> -> vector<1x384xf32>
    %c0_32 = arith.constant 0 : index
    %c0_33 = arith.constant 0 : index
    %42 = vector.load %arg12[%c0_32, %c0_33] : memref<1x384xf32, #tpu.memory_space<vmem>>, vector<1x384xf32>
    %43 = arith.addf %41, %42 : vector<1x384xf32>
    %c0_34 = arith.constant 0 : index
    %c0_35 = arith.constant 0 : index
    %44 = vector.load %arg13[%c0_34, %c0_35] : memref<128x384xbf16, #tpu.memory_space<vmem>>, vector<128x384xbf16>
    %cst_36 = arith.constant dense<0.000000e+00> : vector<1x384xf32>
    %45 = tpu.matmul %4, %44, %cst_36 {dimension_numbers = #tpu.dot_dimension_numbers<[1], [0], [0], [1], [0, 0, 1, 1], [], []>} : vector<1x128xbf16>, vector<128x384xbf16>, vector<1x384xf32> -> vector<1x384xf32>
    %c0_37 = arith.constant 0 : index
    %c0_38 = arith.constant 0 : index
    %46 = vector.load %arg14[%c0_37, %c0_38] : memref<1x384xf32, #tpu.memory_space<vmem>>, vector<1x384xf32>
    %47 = arith.addf %45, %46 : vector<1x384xf32>
    %48 = vector.extract_strided_slice %43 {offsets = [0, 0], sizes = [1, 128], strides = [1, 1]} : vector<1x384xf32> to vector<1x128xf32>
    %49 = vector.extract_strided_slice %47 {offsets = [0, 0], sizes = [1, 128], strides = [1, 1]} : vector<1x384xf32> to vector<1x128xf32>
    %50 = arith.addf %48, %49 : vector<1x128xf32>
    %51 = arith.negf %50 : vector<1x128xf32>
    %52 = math.exp %51 : vector<1x128xf32>
    %cst_39 = arith.constant 1.000000e+00 : f32
    %53 = vector.broadcast %cst_39 : f32 to vector<1x128xf32>
    %54 = arith.addf %53, %52 : vector<1x128xf32>
    %55 = arith.divf %53, %54 : vector<1x128xf32>
    %56 = vector.extract_strided_slice %43 {offsets = [0, 128], sizes = [1, 128], strides = [1, 1]} : vector<1x384xf32> to vector<1x128xf32>
    %57 = vector.extract_strided_slice %47 {offsets = [0, 128], sizes = [1, 128], strides = [1, 1]} : vector<1x384xf32> to vector<1x128xf32>
    %58 = arith.addf %56, %57 : vector<1x128xf32>
    %59 = arith.negf %58 : vector<1x128xf32>
    %60 = math.exp %59 : vector<1x128xf32>
    %cst_40 = arith.constant 1.000000e+00 : f32
    %61 = vector.broadcast %cst_40 : f32 to vector<1x128xf32>
    %62 = arith.addf %61, %60 : vector<1x128xf32>
    %63 = arith.divf %61, %62 : vector<1x128xf32>
    %64 = vector.extract_strided_slice %43 {offsets = [0, 256], sizes = [1, 128], strides = [1, 1]} : vector<1x384xf32> to vector<1x128xf32>
    %65 = vector.extract_strided_slice %47 {offsets = [0, 256], sizes = [1, 128], strides = [1, 1]} : vector<1x384xf32> to vector<1x128xf32>
    %66 = arith.mulf %55, %65 : vector<1x128xf32>
    %67 = arith.addf %64, %66 : vector<1x128xf32>
    %68 = math.tanh %67 : vector<1x128xf32>
    %cst_41 = arith.constant 1.000000e+00 : f32
    %69 = vector.broadcast %cst_41 : f32 to vector<1x128xf32>
    %70 = arith.subf %69, %63 : vector<1x128xf32>
    %71 = arith.mulf %70, %68 : vector<1x128xf32>
    %72 = arith.mulf %63, %3 : vector<1x128xf32>
    %73 = arith.addf %71, %72 : vector<1x128xf32>
    %c0_42 = arith.constant 0 : index
    %c0_43 = arith.constant 0 : index
    %74 = vector.load %arg20[%c0_42, %c0_43] : memref<1x128xf32, #tpu.memory_space<vmem>>, vector<1x128xf32>
    tpu.vector_store %arg20[%c0_42, %c0_43], %73 {strides = array<i32>} : memref<1x128xf32, #tpu.memory_space<vmem>>, vector<1x128xf32>,
    %c0_44 = arith.constant 0 : index
    %c0_45 = arith.constant 0 : index
    %75 = vector.load %arg18[%c0_44, %c0_45] : memref<1x128xf32, #tpu.memory_space<vmem>>, vector<1x128xf32>
    tpu.vector_store %arg18[%c0_44, %c0_45], %73 {strides = array<i32>} : memref<1x128xf32, #tpu.memory_space<vmem>>, vector<1x128xf32>,
    %76 = arith.truncf %73 : vector<1x128xf32> to vector<1x128xbf16>
    %c0_46 = arith.constant 0 : index
    %c0_47 = arith.constant 0 : index
    %77 = vector.load %arg15[%c0_46, %c0_47] : memref<128x128xbf16, #tpu.memory_space<vmem>>, vector<128x128xbf16>
    %cst_48 = arith.constant dense<0.000000e+00> : vector<1x128xf32>
    %78 = tpu.matmul %76, %77, %cst_48 {dimension_numbers = #tpu.dot_dimension_numbers<[1], [0], [0], [1], [0, 0, 1, 1], [], []>} : vector<1x128xbf16>, vector<128x128xbf16>, vector<1x128xf32> -> vector<1x128xf32>
    %c0_49 = arith.constant 0 : index
    %c0_50 = arith.constant 0 : index
    %79 = vector.load %arg16[%c0_49, %c0_50] : memref<1x128xf32, #tpu.memory_space<vmem>>, vector<1x128xf32>
    %80 = arith.addf %78, %79 : vector<1x128xf32>
    %cst_51 = arith.constant dense<0xFF800000> : vector<1xf32>
    %81 = vector.multi_reduction <maximumf>, %80, %cst_51 [1] : vector<1x128xf32> to vector<1xf32>
    %82 = vector.shape_cast %81 : vector<1xf32> to vector<1x1xf32>
    %83 = vector.broadcast %82 : vector<1x1xf32> to vector<1x128xf32>
    %84 = arith.subf %80, %83 : vector<1x128xf32>
    %85 = math.exp %84 : vector<1x128xf32>
    %cst_52 = arith.constant dense<0.000000e+00> : vector<1xf32>
    %86 = vector.multi_reduction <add>, %85, %cst_52 [1] : vector<1x128xf32> to vector<1xf32>
    %87 = vector.shape_cast %86 : vector<1xf32> to vector<1x1xf32>
    %88 = math.log %87 : vector<1x1xf32>
    %89 = vector.broadcast %88 : vector<1x1xf32> to vector<1x128xf32>
    %90 = arith.subf %84, %89 : vector<1x128xf32>
    %c0_53 = arith.constant 0 : index
    %c0_54 = arith.constant 0 : index
    %c0_55 = arith.constant 0 : index
    %91 = vector.load %arg17[%c0_53, %c0_54, %c0_55] : memref<1x1x128xf32, #tpu.memory_space<vmem>>, vector<1x1x128xf32>
    %92 = vector.shape_cast %91 : vector<1x1x128xf32> to vector<1x128xf32>
    %93 = vector.shape_cast %90 : vector<1x128xf32> to vector<1x1x128xf32>
    tpu.vector_store %arg17[%c0_53, %c0_54, %c0_55], %93 {strides = array<i32>} : memref<1x1x128xf32, #tpu.memory_space<vmem>>, vector<1x1x128xf32>,
    return
  }
  func.func @transform_0(%arg0: i32, %arg1: memref<1xi32, #tpu.memory_space<smem>>) -> (i32, i32, i32) {
    %0 = arith.index_cast %arg0 : i32 to index
    %1 = memref.load %arg1[%0] : memref<1xi32, #tpu.memory_space<smem>>
    %c0_i32 = arith.constant 0 : i32
    %c0_i32_0 = arith.constant 0 : i32
    %c0_i32_1 = arith.constant 0 : i32
    return %1, %c0_i32, %c0_i32_0 : i32, i32, i32
  }
  func.func @transform_1(%arg0: i32, %arg1: memref<1xi32, #tpu.memory_space<smem>>) -> (i32, i32) {
    %c0_i32 = arith.constant 0 : i32
    %c0_i32_0 = arith.constant 0 : i32
    %c0_i32_1 = arith.constant 0 : i32
    return %c0_i32, %c0_i32_0 : i32, i32
  }
  func.func @transform_2(%arg0: i32, %arg1: memref<1xi32, #tpu.memory_space<smem>>) -> (i32, i32) {
    %c0_i32 = arith.constant 0 : i32
    %c0_i32_0 = arith.constant 0 : i32
    %c0_i32_1 = arith.constant 0 : i32
    return %c0_i32, %c0_i32_0 : i32, i32
  }
  func.func @transform_3(%arg0: i32, %arg1: memref<1xi32, #tpu.memory_space<smem>>) -> (i32, i32) {
    %c0_i32 = arith.constant 0 : i32
    %c0_i32_0 = arith.constant 0 : i32
    %c0_i32_1 = arith.constant 0 : i32
    return %c0_i32, %c0_i32_0 : i32, i32
  }
  func.func @transform_4(%arg0: i32, %arg1: memref<1xi32, #tpu.memory_space<smem>>) -> (i32, i32) {
    %c0_i32 = arith.constant 0 : i32
    %c0_i32_0 = arith.constant 0 : i32
    %c0_i32_1 = arith.constant 0 : i32
    return %c0_i32, %c0_i32_0 : i32, i32
  }
  func.func @transform_5(%arg0: i32, %arg1: memref<1xi32, #tpu.memory_space<smem>>) -> (i32, i32) {
    %c0_i32 = arith.constant 0 : i32
    %c0_i32_0 = arith.constant 0 : i32
    %c0_i32_1 = arith.constant 0 : i32
    return %c0_i32, %c0_i32_0 : i32, i32
  }
  func.func @transform_6(%arg0: i32, %arg1: memref<1xi32, #tpu.memory_space<smem>>) -> (i32, i32) {
    %c0_i32 = arith.constant 0 : i32
    %c0_i32_0 = arith.constant 0 : i32
    %c0_i32_1 = arith.constant 0 : i32
    return %c0_i32, %c0_i32_0 : i32, i32
  }
  func.func @transform_7(%arg0: i32, %arg1: memref<1xi32, #tpu.memory_space<smem>>) -> (i32, i32) {
    %c0_i32 = arith.constant 0 : i32
    %c0_i32_0 = arith.constant 0 : i32
    %c0_i32_1 = arith.constant 0 : i32
    return %c0_i32, %c0_i32_0 : i32, i32
  }
  func.func @transform_8(%arg0: i32, %arg1: memref<1xi32, #tpu.memory_space<smem>>) -> (i32, i32) {
    %c0_i32 = arith.constant 0 : i32
    %c0_i32_0 = arith.constant 0 : i32
    %c0_i32_1 = arith.constant 0 : i32
    return %c0_i32, %c0_i32_0 : i32, i32
  }
  func.func @transform_9(%arg0: i32, %arg1: memref<1xi32, #tpu.memory_space<smem>>) -> (i32, i32) {
    %c0_i32 = arith.constant 0 : i32
    %c0_i32_0 = arith.constant 0 : i32
    %c0_i32_1 = arith.constant 0 : i32
    return %c0_i32, %c0_i32_0 : i32, i32
  }
  func.func @transform_10(%arg0: i32, %arg1: memref<1xi32, #tpu.memory_space<smem>>) -> (i32, i32) {
    %c0_i32 = arith.constant 0 : i32
    %c0_i32_0 = arith.constant 0 : i32
    %c0_i32_1 = arith.constant 0 : i32
    return %c0_i32, %c0_i32_0 : i32, i32
  }
  func.func @transform_11(%arg0: i32, %arg1: memref<1xi32, #tpu.memory_space<smem>>) -> (i32, i32) {
    %c0_i32 = arith.constant 0 : i32
    %c0_i32_0 = arith.constant 0 : i32
    %c0_i32_1 = arith.constant 0 : i32
    return %c0_i32, %c0_i32_0 : i32, i32
  }
  func.func @transform_12(%arg0: i32, %arg1: memref<1xi32, #tpu.memory_space<smem>>) -> (i32, i32) {
    %c0_i32 = arith.constant 0 : i32
    %c0_i32_0 = arith.constant 0 : i32
    %c0_i32_1 = arith.constant 0 : i32
    return %c0_i32, %c0_i32_0 : i32, i32
  }
  func.func @transform_13(%arg0: i32, %arg1: memref<1xi32, #tpu.memory_space<smem>>) -> (i32, i32) {
    %c0_i32 = arith.constant 0 : i32
    %c0_i32_0 = arith.constant 0 : i32
    %c0_i32_1 = arith.constant 0 : i32
    return %c0_i32, %c0_i32_0 : i32, i32
  }
  func.func @transform_14(%arg0: i32, %arg1: memref<1xi32, #tpu.memory_space<smem>>) -> (i32, i32) {
    %c0_i32 = arith.constant 0 : i32
    %c0_i32_0 = arith.constant 0 : i32
    %c0_i32_1 = arith.constant 0 : i32
    return %c0_i32, %c0_i32_0 : i32, i32
  }
  func.func @transform_15(%arg0: i32, %arg1: memref<1xi32, #tpu.memory_space<smem>>) -> (i32, i32, i32) {
    %c0_i32 = arith.constant 0 : i32
    %c0_i32_0 = arith.constant 0 : i32
    %c0_i32_1 = arith.constant 0 : i32
    return %arg0, %c0_i32, %c0_i32_0 : i32, i32, i32
  }
  func.func @transform_16(%arg0: i32, %arg1: memref<1xi32, #tpu.memory_space<smem>>) -> (i32, i32) {
    %c0_i32 = arith.constant 0 : i32
    %c0_i32_0 = arith.constant 0 : i32
    %c0_i32_1 = arith.constant 0 : i32
    return %c0_i32, %c0_i32_0 : i32, i32
  }
  func.func @transform_17(%arg0: i32, %arg1: memref<1xi32, #tpu.memory_space<smem>>) -> (i32, i32, i32) {
    %c0_i32 = arith.constant 0 : i32
    %c0_i32_0 = arith.constant 0 : i32
    %c0_i32_1 = arith.constant 0 : i32
    return %arg0, %c0_i32, %c0_i32_0 : i32, i32, i32
  }
}

</mosaic_0001>

<bundles_post_ra>
// kernel: tpu_custom_call.1
= control target key start
LH: loop header
LB: loop body
LE: loop exit
PB: predicated region body
PF: predicated region fallthrough
CT: control target
= control target key end

     0   :  { %s2549_s0 = inlined_call_operand.<no memory space> [shape: s32[1], index: 0, kind: input, shape index: {}]   ;;  %s2550_s1 = inlined_call_operand.vmem [shape: bf16[16,1,128], index: 1, kind: input, shape index: {}]   ;;  %s2551_s2 = inlined_call_operand.vmem [shape: f32[1,128], index: 2, kind: input, shape index: {}]   ;;  %s2552_s3 = inlined_call_operand.hbm [shape: bf16[128,128], index: 3, kind: input, shape index: {}]   ;;  %s2553_s4 = inlined_call_operand.hbm [shape: bf16[128,128], index: 4, kind: input, shape index: {}]   ;;  %s2554_s5 = inlined_call_operand.hbm [shape: bf16[128,128], index: 5, kind: input, shape index: {}]   ;;  %s2555_s6 = inlined_call_operand.vmem [shape: f32[1,128], index: 6, kind: input, shape index: {}]   ;;  %s2556_s7 = inlined_call_operand.hbm [shape: bf16[128,128], index: 7, kind: input, shape index: {}]   ;;  %s2557_s8 = inlined_call_operand.hbm [shape: bf16[128,128], index: 8, kind: input, shape index: {}]   ;;  %s2558_s9 = inlined_call_operand.vmem [shape: f32[1,128], index: 9, kind: input, shape index: {}]   ;;  %s2559_s10 = inlined_call_operand.hbm [shape: bf16[128,384], index: 10, kind: input, shape index: {}]   ;;  %s2560_s11 = inlined_call_operand.vmem [shape: f32[1,384], index: 11, kind: input, shape index: {}]   ;;  %s2561_s12 = inlined_call_operand.hbm [shape: bf16[128,384], index: 12, kind: input, shape index: {}]   ;;  %s2562_s13 = inlined_call_operand.vmem [shape: f32[1,384], index: 13, kind: input, shape index: {}]   ;;  %s2563_s14 = inlined_call_operand.vmem [shape: bf16[128,128], index: 14, kind: input, shape index: {}]   ;;  %s2564_s15 = inlined_call_operand.vmem [shape: f32[1,128], index: 15, kind: input, shape index: {}]   ;;  %s2565_s16 = inlined_call_operand.hbm [shape: f32[1,1,128], index: 16, kind: output, shape index: {0}]   ;;  %s2566_s17 = inlined_call_operand.hbm [shape: f32[1,128], index: 17, kind: output, shape index: {1}]   ;;  %s2567_s18 = inlined_call_operand.hbm [shape: f32[1,1,128], index: 18, kind: output, shape index: {2}]  }
   0x1   :  { %2571 = sst [smem:[#allocation27_spill]] %s2549_s0 }
   0x2   :  { %2572 = sst [smem:[#allocation28_spill]] %s2550_s1 }
   0x3   :  { %2573 = sst [smem:[#allocation29_spill]] %s2551_s2 }
   0x4   :  { %25 = vsyncpa [#allocation6], 0 }
   0x5   :  { %26 = vsyncpa [#allocation9], 0 }
   0x6   :  { %27 = vsyncpa [#allocation12], 0 }
   0x7   :  { %28 = vsyncpa [#allocation15], 0 }
   0x8   :  { %29 = vsyncpa [#allocation7], 0 }
   0x9   :  { %30 = vsyncpa [#allocation19], 0  ;;  %s2140_s27 = smov [#allocation8]   ;;  %s2141_s29 = smov [#allocation11]  }
   0xa   :  { %s57_s28 = sshll.u32 %s2140_s27, 4  ;;  %s83_s30 = sshll.u32 %s2141_s29, 4  ;;  %s58_s28 = int_to_ptr.vmem [resolvable:$true] %s57_s28  ;;  %s2252_s30 = int_to_ptr.vmem [resolvable:$true] %s83_s30 }
   0xb   :  { %s1908_s1 = scalar_lea.hbm %s2553_s4, 1024 }
   0xc   :  { %p1909_p0 = scmp.ne.s32.totalorder %s2553_s4, %s1908_s1  ;;  %p1912_p1 = scmp.lt.u32.totalorder %s1908_s1, %s2553_s4 }
   0xe   :  { %p1914_p2 = pnand %p1912_p1, %p1909_p0 }
  0x10   :  { %1917 = shalt.err (!%p1914_p2)
}
  0x11   :  { %s1918_s23 = scalar_lea.vmem %s58_s28, 1024  ;;  %p1923_p4 = scmp.lt.s32.totalorder %s58_s28, %s58_s28 }
  0x12   :  { %p1919_p3 = scmp.ne.s32.totalorder %s58_s28, %s1918_s23  ;;  %p1924_p5 = scmp.lt.s32.totalorder %s1918_s23, %s1918_s23 }
  0x14   :  { %p1925_p6 = por %p1924_p5, %p1923_p4 }
  0x16   :  { %p1926_p7 = pnand %p1925_p6, %p1919_p3 }
  0x18   :  { %1929 = shalt.err (!%p1926_p7)
}
  0x19   :  { %s2569_s24 = smov 64   ;;  %s2143_s25 = smov 4  }
  0x1a   :  { %63 = dma.hbm_to_vmem [thread:$0]  %s2553_s4, 1024, %s58_s28, [#allocation9], %s2569_s24, %s2569_s24, %s2143_s25  }
  0x1b   :  { %s1930_s19 = scalar_lea.hbm %s2556_s7, 1024 }
  0x1c   :  { %p1931_p8 = scmp.ne.s32.totalorder %s2556_s7, %s1930_s19  ;;  %p1934_p9 = scmp.lt.u32.totalorder %s1930_s19, %s2556_s7 }
  0x1e   :  { %p1936_p10 = pnand %p1934_p9, %p1931_p8 }
  0x20   :  { %1939 = shalt.err (!%p1936_p10)
}
  0x21   :  { %s1940_s2 = scalar_lea.vmem %s2252_s30, 1024  ;;  %p1945_p12 = scmp.lt.s32.totalorder %s2252_s30, %s2252_s30 }
  0x22   :  { %p1941_p11 = scmp.ne.s32.totalorder %s2252_s30, %s1940_s2  ;;  %p1946_p13 = scmp.lt.s32.totalorder %s1940_s2, %s1940_s2 }
  0x24   :  { %p1947_p0 = por %p1946_p13, %p1945_p12 }
  0x26   :  { %p1948_p1 = pnand %p1947_p0, %p1941_p11 }
  0x28   :  { %1951 = shalt.err (!%p1948_p1)
}
  0x29   :  { %89 = dma.hbm_to_vmem [thread:$0]  %s2556_s7, 1024, %s2252_s30, [#allocation12], %s2569_s24, %s2569_s24, %s2143_s25  }
  0x2a   :  { %s2144_s23 = smov [#allocation14]   ;;  %s1952_s0 = scalar_lea.hbm %s2559_s10, 3072 }
  0x2b   :  { %s109_s26 = sshll.u32 %s2144_s23, 4  ;;  %p1953_p2 = scmp.ne.s32.totalorder %s2559_s10, %s1952_s0  ;;  %s110_s26 = int_to_ptr.vmem [resolvable:$true] %s109_s26 }
  0x2c   :  { %p1956_p3 = scmp.lt.u32.totalorder %s1952_s0, %s2559_s10 }
  0x2e   :  { %p1958_p4 = pnand %p1956_p3, %p1953_p2 }
  0x30   :  { %1961 = shalt.err (!%p1958_p4)
}
  0x31   :  { %s1962_s22 = scalar_lea.vmem %s110_s26, 3072  ;;  %p1967_p6 = scmp.lt.s32.totalorder %s110_s26, %s110_s26 }
  0x32   :  { %p1963_p5 = scmp.ne.s32.totalorder %s110_s26, %s1962_s22  ;;  %p1968_p7 = scmp.lt.s32.totalorder %s1962_s22, %s1962_s22 }
  0x34   :  { %p1969_p8 = por %p1968_p7, %p1967_p6 }
  0x36   :  { %p1970_p9 = pnand %p1969_p8, %p1963_p5 }
  0x38   :  { %1973 = shalt.err (!%p1970_p9)
}
  0x39   :  { %s2145_s7 = smov 192   ;;  %s2146_s30 = smov 12  }
  0x3a   :  { %115 = dma.hbm_to_vmem [thread:$0]  %s2559_s10, 3072, %s110_s26, [#allocation15], %s2145_s7, %s2145_s7, %s2146_s30  }
  0x3b   :  { %s2147_s28 = smov [#allocation5]   ;;  %s2148_s27 = smov [#allocation10]  }
  0x3c   :  { %s45_s23 = sshll.u32 %s2147_s28, 4  ;;  %s69_s29 = sshll.u32 %s2148_s27, 4  ;;  %s46_s23 = int_to_ptr.vmem [resolvable:$true] %s45_s23  ;;  %s70_s29 = int_to_ptr.vmem [resolvable:$true] %s69_s29 }
  0x3d   :  { %s1974_s1 = scalar_lea.hbm %s2552_s3, 1024 }
  0x3e   :  { %p1975_p10 = scmp.ne.s32.totalorder %s2552_s3, %s1974_s1  ;;  %p1978_p11 = scmp.lt.u32.totalorder %s1974_s1, %s2552_s3 }
  0x40   :  { %p1980_p12 = pnand %p1978_p11, %p1975_p10 }
  0x42   :  { %1983 = shalt.err (!%p1980_p12)
}
  0x43   :  { %s1984_s10 = scalar_lea.vmem %s46_s23, 1024  ;;  %p1989_p0 = scmp.lt.s32.totalorder %s46_s23, %s46_s23 }
  0x44   :  { %p1985_p13 = scmp.ne.s32.totalorder %s46_s23, %s1984_s10  ;;  %p1990_p1 = scmp.lt.s32.totalorder %s1984_s10, %s1984_s10 }
  0x46   :  { %p1991_p2 = por %p1990_p1, %p1989_p0 }
  0x48   :  { %p1992_p3 = pnand %p1991_p2, %p1985_p13 }
  0x4a   :  { %1995 = shalt.err (!%p1992_p3)
}
  0x4b   :  { %s2574_s26 = smov 64   ;;  %s1996_s27 = scalar_lea.hbm %s2554_s5, 1024 }
  0x4c   :  { %51 = dma.hbm_to_vmem [thread:$0]  %s2552_s3, 1024, %s46_s23, [#allocation6], %s2574_s26, %s2574_s26, %s2143_s25  }
  0x4d   :  { %p1997_p4 = scmp.ne.s32.totalorder %s2554_s5, %s1996_s27  ;;  %p2000_p5 = scmp.lt.u32.totalorder %s1996_s27, %s2554_s5 }
  0x4f   :  { %p2002_p6 = pnand %p2000_p5, %p1997_p4 }
  0x51   :  { %2005 = shalt.err (!%p2002_p6)
}
  0x52   :  { %s2006_s21 = scalar_lea.vmem %s70_s29, 1024  ;;  %p2011_p8 = scmp.lt.s32.totalorder %s70_s29, %s70_s29 }
  0x53   :  { %p2007_p7 = scmp.ne.s32.totalorder %s70_s29, %s2006_s21  ;;  %p2012_p9 = scmp.lt.s32.totalorder %s2006_s21, %s2006_s21 }
  0x55   :  { %p2013_p10 = por %p2012_p9, %p2011_p8 }
  0x57   :  { %p2014_p11 = pnand %p2013_p10, %p2007_p7 }
  0x59   :  { %2017 = shalt.err (!%p2014_p11)
}
  0x5a   :  { %75 = dma.hbm_to_vmem [thread:$0]  %s2554_s5, 1024, %s70_s29, [#allocation9], %s2574_s26, %s2574_s26, %s2143_s25  }
  0x5b   :  { %s2149_s22 = smov [#allocation13]   ;;  %s2150_s2 = smov [#allocation16]  }
  0x5c   :  { %s95_s10 = sshll.u32 %s2149_s22, 4  ;;  %s123_s4 = sshll.u32 %s2150_s2, 4  ;;  %s96_s10 = int_to_ptr.vmem [resolvable:$true] %s95_s10  ;;  %s124_s4 = int_to_ptr.vmem [resolvable:$true] %s123_s4 }
  0x5d   :  { %s2018_s27 = scalar_lea.hbm %s2557_s8, 1024 }
  0x5e   :  { %p2019_p12 = scmp.ne.s32.totalorder %s2557_s8, %s2018_s27  ;;  %p2022_p13 = scmp.lt.u32.totalorder %s2018_s27, %s2557_s8 }
  0x60   :  { %p2024_p0 = pnand %p2022_p13, %p2019_p12 }
  0x62   :  { %2027 = shalt.err (!%p2024_p0)
}
  0x63   :  { %s2028_s5 = scalar_lea.vmem %s96_s10, 1024  ;;  %p2033_p2 = scmp.lt.s32.totalorder %s96_s10, %s96_s10 }
  0x64   :  { %p2029_p1 = scmp.ne.s32.totalorder %s96_s10, %s2028_s5  ;;  %p2034_p3 = scmp.lt.s32.totalorder %s2028_s5, %s2028_s5 }
  0x66   :  { %p2035_p4 = por %p2034_p3, %p2033_p2 }
  0x68   :  { %p2036_p5 = pnand %p2035_p4, %p2029_p1 }
  0x6a   :  { %2039 = shalt.err (!%p2036_p5)
}
  0x6b   :  { %101 = dma.hbm_to_vmem [thread:$0]  %s2557_s8, 1024, %s96_s10, [#allocation12], %s2574_s26, %s2574_s26, %s2143_s25  }
  0x6c   :  { %s2040_s22 = scalar_lea.hbm %s2561_s12, 3072 }
  0x6d   :  { %p2041_p6 = scmp.ne.s32.totalorder %s2561_s12, %s2040_s22  ;;  %p2044_p7 = scmp.lt.u32.totalorder %s2040_s22, %s2561_s12 }
  0x6f   :  { %p2046_p8 = pnand %p2044_p7, %p2041_p6 }
  0x71   :  { %2049 = shalt.err (!%p2046_p8)
}
  0x72   :  { %s2050_s0 = scalar_lea.vmem %s124_s4, 3072  ;;  %p2055_p10 = scmp.lt.s32.totalorder %s124_s4, %s124_s4 }
  0x73   :  { %p2051_p9 = scmp.ne.s32.totalorder %s124_s4, %s2050_s0  ;;  %p2056_p11 = scmp.lt.s32.totalorder %s2050_s0, %s2050_s0 }
  0x75   :  { %p2057_p12 = por %p2056_p11, %p2055_p10 }
  0x77   :  { %p2058_p13 = pnand %p2057_p12, %p2051_p9 }
  0x79   :  { %2061 = shalt.err (!%p2058_p13)
}
  0x7a   :  { %129 = dma.hbm_to_vmem [thread:$0]  %s2561_s12, 3072, %s124_s4, [#allocation15], %s2145_s7, %s2145_s7, %s2146_s30  }
  0x7b   :  { %2128 = dma.done.wait [#allocation6], 1024  }
  0x7c   :  { %2129 = vsyncadd [#allocation6], 4294966272 }
  0x7d   :  { %2130 = dma.done.wait [#allocation9], 2048  }
  0x7e   :  { %2131 = vsyncadd [#allocation9], 4294965248 }
  0x7f   :  { %2132 = dma.done.wait [#allocation12], 2048  }
  0x80   :  { %2133 = vsyncadd [#allocation12], 4294965248 }
  0x81   :  { %2134 = dma.done.wait [#allocation15], 6144  }
  0x82   :  { %2135 = vsyncadd [#allocation15], 4294961152  ;;  %v2151_v0 = vmov 0.0   ;;  %vm2152_vm0 = vmmov 0   ;;  %v1778_v1 = vld [vmem:[#allocation10] sm:$0xff]   ;;  %v1780_v3 = vld [vmem:[#allocation10 + $0x8] sm:$0xff]  }
  0x83   :  { %1593 = vmatprep.subr.bf16.mxu0 %v2151_v0  ;;  %1613 = vmatprep.subr.bf16.mxu1 %v2151_v0  ;;  %v1779_v2 = vld [vmem:[#allocation8] sm:$0xff]   ;;  %v1781_v4 = vld [vmem:[#allocation8 + $0x8] sm:$0xff]   ;;  %v1782_v5 = vld [vmem:[#allocation10 + $0x10] sm:$0xff]   ;;  %s2575_s30 = sld [smem:[#allocation27_spill]]  ;;  %s2576_s4 = sld [smem:[#allocation29_spill]]  ;;  %vm386_vm1 = vcmask 1040384  }
  0x84   :  { %1609 = vmatprep.mubr.msk.bf16.mxu0 %vm2152_vm0, %v2151_v0  ;;  %1629 = vmatprep.mubr.msk.bf16.mxu1 %vm2152_vm0, %v2151_v0  ;;  %v1783_v6 = vld [vmem:[#allocation8 + $0x10] sm:$0xff]   ;;  %v1784_v7 = vld [vmem:[#allocation10 + $0x18] sm:$0xff]   ;;  %v1786_v9 = vld [vmem:[#allocation10 + $0x20] sm:$0xff]   ;;  %s2577_s29 = sld [smem:[#allocation28_spill]] }
  0x85   :  { %1594 = vmatpush3.bf16.msra.mxu0 %v1778_v1  ;;  %1614 = vmatpush3.bf16.msra.mxu1 %v1779_v2  ;;  %v1785_v8 = vld [vmem:[#allocation8 + $0x18] sm:$0xff]   ;;  %v1787_v10 = vld [vmem:[#allocation8 + $0x20] sm:$0xff]   ;;  %v1788_v11 = vld [vmem:[#allocation10 + $0x28] sm:$0xff]  }
  0x86   :  { %1595 = vmatprep.subr.bf16.mxu0 %v2151_v0  ;;  %1615 = vmatprep.subr.bf16.mxu1 %v2151_v0  ;;  %v1789_v13 = vld [vmem:[#allocation8 + $0x28] sm:$0xff]   ;;  %v1790_v14 = vld [vmem:[#allocation10 + $0x30] sm:$0xff]   ;;  %v1792_v16 = vld [vmem:[#allocation10 + $0x38] sm:$0xff]  }
  0x87   :  { %v1791_v15 = vld [vmem:[#allocation8 + $0x30] sm:$0xff]   ;;  %v1793_v18 = vld [vmem:[#allocation8 + $0x38] sm:$0xff]   ;;  %v1794_v33 = vld [vmem:[#allocation5] sm:$0xff]  }
  0x88   :  { %v384_v24 = vld [vmem:[%s2555_s6] sm:$0x1]  ;;  %v1795_v34 = vld [vmem:[#allocation5 + $0x8] sm:$0xff]   ;;  %v1796_v35 = vld [vmem:[#allocation5 + $0x10] sm:$0xff]  }
  0x89   :  { %1596 = vmatpush3.bf16.msra.mxu0 %v1780_v3  ;;  %1616 = vmatpush3.bf16.msra.mxu1 %v1781_v4  ;;  %p162_p0 = scmp.lt.s32.totalorder %s2575_s30, 15  ;;  %v171_v12 = vld [vmem:[%s2576_s4] sm:$0x1]  ;;  %v1798_v42 = vld [vmem:[#allocation5 + $0x20] sm:$0xff]   ;;  %v1799_v43 = vld [vmem:[#allocation5 + $0x28] sm:$0xff]  }
  0x8a   :  { %1597 = vmatprep.subr.bf16.mxu0 %v2151_v0  ;;  %1617 = vmatprep.subr.bf16.mxu1 %v2151_v0  ;;  %172 = vst [vmem:[#allocation2] sm:$0x1] %v171_v12  ;;  %v1797_v36 = vld [vmem:[#allocation5 + $0x18] sm:$0xff]   ;;  %v1800_v44 = vld [vmem:[#allocation5 + $0x30] sm:$0xff]   ;;  %v1803_v46 = vld [vmem:[#allocation13] sm:$0xff]  }
  0x8b   :  { %s2579_s30 = smov (!%p162_p0, %s2575_s30), 15  ;;  %v1801_v45 = vld [vmem:[#allocation5 + $0x38] sm:$0xff]   ;;  %v1805_v47 = vld [vmem:[#allocation13 + $0x8] sm:$0xff]   ;;  %v1807_v48 = vld [vmem:[#allocation13 + $0x10] sm:$0xff]  }
  0x8c   :  { %s164_s21 = scalar_lea.vmem %s2577_s29, %s2579_s30  ;;  %v1809_v49 = vld [vmem:[#allocation13 + $0x18] sm:$0xff]   ;;  %v1811_v50 = vld [vmem:[#allocation13 + $0x20] sm:$0xff]   ;;  %v1813_v51 = vld [vmem:[#allocation13 + $0x28] sm:$0xff]  }
  0x8d   :  { %1598 = vmatpush3.bf16.msra.mxu0 %v1782_v5  ;;  %1618 = vmatpush3.bf16.msra.mxu1 %v1783_v6  ;;  %v2402_v20 = vld [vmem:[%s164_s21] sm:$0x1]  ;;  %v1815_v52 = vld [vmem:[#allocation13 + $0x30] sm:$0xff]   ;;  %v1802_v56 = vld [vmem:[#allocation11] sm:$0xff]  }
  0x8e   :  { %1599 = vmatprep.subr.bf16.mxu0 %v2151_v0  ;;  %1619 = vmatprep.subr.bf16.mxu1 %v2151_v0  ;;  %v1804_v58 = vld [vmem:[#allocation11 + $0x8] sm:$0xff]   ;;  %v1806_v59 = vld [vmem:[#allocation11 + $0x10] sm:$0xff]   ;;  %v1808_v60 = vld [vmem:[#allocation11 + $0x18] sm:$0xff]  }
  0x8f   :  { %v1810_v61 = vld [vmem:[#allocation11 + $0x20] sm:$0xff]   ;;  %v1812_v62 = vld [vmem:[#allocation11 + $0x28] sm:$0xff]   ;;  %v1814_v63 = vld [vmem:[#allocation11 + $0x30] sm:$0xff]  }
  0x90   :  { %v1816_v1 = vld [vmem:[#allocation11 + $0x38] sm:$0xff]   ;;  %v1820_v3 = vld [vmem:[#allocation14 + $0x4] ss:$12 sps:$4 sm:$0xff]   ;;  %v1821_v4 = vld [vmem:[#allocation14 + $0x8] ss:$12 sps:$4 sm:$0xff]  }
  0x91   :  { %1600 = vmatpush3.bf16.msra.mxu0 %v1784_v7  ;;  %1620 = vmatpush3.bf16.msra.mxu1 %v1785_v8  ;;  %v2391_v17 = vld [vmem:[#allocation2] sm:$0x1]  ;;  %v1825_v5 = vld [vmem:[#allocation14 + $0x20] ss:$12 sps:$4 sm:$0xff]   ;;  %v1829_v6 = vld [vmem:[#allocation14 + $0x38] ss:$12 sps:$4 sm:$0xff]  }
  0x92   :  { %1601 = vmatprep.subr.bf16.mxu0 %v2151_v0  ;;  %1621 = vmatprep.subr.bf16.mxu1 %v2151_v0  ;;  %v2400_v19 = vpack.c.bf16 %v2391_v17, %v2391_v17  ;;  %v1817_v2 = vld [vmem:[#allocation13 + $0x38] sm:$0xff]   ;;  %v1837_v8 = vld [vmem:[#allocation14 + $0x68] ss:$12 sps:$4 sm:$0xff]  }
  0x93   :  { %v1833_v7 = vld [vmem:[#allocation14 + $0x50] ss:$12 sps:$4 sm:$0xff]  }
  0x95   :  { %1602 = vmatpush3.bf16.msra.mxu0 %v1786_v9  ;;  %1622 = vmatpush3.bf16.msra.mxu1 %v1787_v10  ;;  %v1841_v9 = vld [vmem:[#allocation14 + $0x80] ss:$12 sps:$4 sm:$0xff]  }
  0x96   :  { %1603 = vmatprep.subr.bf16.mxu0 %v2151_v0  ;;  %1623 = vmatprep.subr.bf16.mxu1 %v2151_v0 }
  0x99   :  { %1604 = vmatpush3.bf16.msra.mxu0 %v1788_v11  ;;  %1624 = vmatpush3.bf16.msra.mxu1 %v1789_v13  ;;  %v1818_v11 = vld [vmem:[#allocation14] ss:$12 sps:$4 sm:$0xff]  }
  0x9a   :  { %1605 = vmatprep.subr.bf16.mxu0 %v2151_v0  ;;  %1625 = vmatprep.subr.bf16.mxu1 %v2151_v0 }
  0x9d   :  { %1606 = vmatpush3.bf16.msra.mxu0 %v1790_v14  ;;  %1626 = vmatpush3.bf16.msra.mxu1 %v1791_v15  ;;  %v1824_v14 = vld [vmem:[#allocation14 + $0x1c] ss:$12 sps:$4 sm:$0xff]  }
  0x9e   :  { %1607 = vmatprep.subr.bf16.mxu0 %v2151_v0  ;;  %1627 = vmatprep.subr.bf16.mxu1 %v2151_v0 }
  0xa1   :  { %1608 = vmatpush3.bf16.msra.mxu0 %v1792_v16  ;;  %1628 = vmatpush3.bf16.msra.mxu1 %v1793_v18  ;;  %v1822_v18 = vld [vmem:[#allocation14 + $0x18] ss:$12 sps:$4 sm:$0xff]  }
  0xa2   :  { %1633 = vmatprep.subr.bf16.mxu0 %v2151_v0  ;;  %1653 = vmatprep.subr.bf16.mxu1 %v2151_v0 }
  0xa4   :  { %1610 = vmatmul.mubr.bf16.vlgmr.msra.gmra.mrb[0].mxu0 %v2400_v19  ;;  %1630 = vmatmul.mubr.bf16.vlgmr.msra.gmra.mrb[0].mxu1 %v2402_v20 }
  0xa5   :  { %1649 = vmatprep.mubr.msk.bf16.mxu0 %vm2152_vm0, %v2151_v0  ;;  %1669 = vmatprep.mubr.msk.bf16.mxu1 %vm2152_vm0, %v2151_v0 }
  0xa6   :  { %1634 = vmatpush3.bf16.msra.mxu0 %v1794_v33  ;;  %1654 = vmatpush3.bf16.msra.mxu1 %v1803_v46  ;;  %v1842_v33 = vld [vmem:[#allocation14 + $0x90] ss:$12 sps:$4 sm:$0xff]  }
  0xa7   :  { %1635 = vmatprep.subr.bf16.mxu0 %v2151_v0  ;;  %1655 = vmatprep.subr.bf16.mxu1 %v2151_v0 }
  0xaa   :  { %1636 = vmatpush3.bf16.msra.mxu0 %v1795_v34  ;;  %1656 = vmatpush3.bf16.msra.mxu1 %v1805_v47  ;;  %v1845_v34 = vld [vmem:[#allocation14 + $0x98] ss:$12 sps:$4 sm:$0xff]  }
  0xab   :  { %1637 = vmatprep.subr.bf16.mxu0 %v2151_v0  ;;  %1657 = vmatprep.subr.bf16.mxu1 %v2151_v0 }
  0xae   :  { %1638 = vmatpush3.bf16.msra.mxu0 %v1796_v35  ;;  %1658 = vmatpush3.bf16.msra.mxu1 %v1807_v48  ;;  %v1848_v35 = vld [vmem:[#allocation14 + $0xac] ss:$12 sps:$4 sm:$0xff]  }
  0xaf   :  { %1639 = vmatprep.subr.bf16.mxu0 %v2151_v0  ;;  %1659 = vmatprep.subr.bf16.mxu1 %v2151_v0  ;;  %v1850_v48 = vld [vmem:[#allocation16] ss:$12 sps:$4 sm:$0xff]  }
  0xb2   :  { %1640 = vmatpush3.bf16.msra.mxu0 %v1797_v36  ;;  %1660 = vmatpush3.bf16.msra.mxu1 %v1809_v49  ;;  %v1846_v36 = vld [vmem:[#allocation14 + $0xa8] ss:$12 sps:$4 sm:$0xff]  }
  0xb3   :  { %1641 = vmatprep.subr.bf16.mxu0 %v2151_v0  ;;  %1661 = vmatprep.subr.bf16.mxu1 %v2151_v0  ;;  %v1871_v49 = vld [vmem:[#allocation16 + $0x8] ss:$12 sps:$4 sm:$0xff]  }
  0xb6   :  { %1642 = vmatpush3.bf16.msra.mxu0 %v1798_v42  ;;  %1662 = vmatpush3.bf16.msra.mxu1 %v1811_v50 }
  0xb7   :  { %1643 = vmatprep.subr.bf16.mxu0 %v2151_v0  ;;  %1663 = vmatprep.subr.bf16.mxu1 %v2151_v0 }
  0xba   :  { %1644 = vmatpush3.bf16.msra.mxu0 %v1799_v43  ;;  %1664 = vmatpush3.bf16.msra.mxu1 %v1813_v51  ;;  %v1855_v51 = vld [vmem:[#allocation16 + $0x1c] ss:$12 sps:$4 sm:$0xff]  }
  0xbb   :  { %1645 = vmatprep.subr.bf16.mxu0 %v2151_v0  ;;  %1665 = vmatprep.subr.bf16.mxu1 %v2151_v0 }
  0xbe   :  { %1646 = vmatpush3.bf16.msra.mxu0 %v1800_v44  ;;  %1666 = vmatpush3.bf16.msra.mxu1 %v1815_v52  ;;  %v1853_v52 = vld [vmem:[#allocation16 + $0x18] ss:$12 sps:$4 sm:$0xff]  }
  0xbf   :  { %1647 = vmatprep.subr.bf16.mxu0 %v2151_v0  ;;  %1667 = vmatprep.subr.bf16.mxu1 %v2151_v0 }
  0xc2   :  { %1648 = vmatpush3.bf16.msra.mxu0 %v1801_v45  ;;  %1668 = vmatpush3.bf16.msra.mxu1 %v1817_v2  ;;  %v1879_v2 = vld [vmem:[#allocation16 + $0x80] ss:$12 sps:$4 sm:$0xff]  }
  0xc3   :  { %1673 = vmatprep.subr.bf16.mxu0 %v2151_v0  ;;  %894 = vmatprep.subr.bf16.mxu1 %v1820_v3  ;;  %v1870_v3 = vld [vmem:[#allocation16 + $0x94] ss:$12 sps:$4 sm:$0xff]  }
 0x177   :  { %v290_v21 = vpop.f32.mrb[0].mxu0  ;;  %v378_v22 = vpop.f32.mrb[0].mxu1 }
 0x178   :  { %v1611_v23 = vpop.f32.mrb[1].mxu0  ;;  %v379_v25 = vadd.f32 %v378_v22, %v290_v21  ;;  %v1631_v26 = vpop.f32.mrb[1].mxu1  ;;  %v1826_v21 = vld [vmem:[#allocation14 + $0x30] ss:$12 sps:$4 sm:$0xff]   ;;  %v1832_v22 = vld [vmem:[#allocation14 + $0x4c] ss:$12 sps:$4 sm:$0xff]  }
 0x179   :  { %v293_v27 = vpop.f32.mrb[2].mxu0  ;;  %v381_v28 = vpop.f32.mrb[2].mxu1  ;;  %v1830_v23 = vld [vmem:[#allocation14 + $0x48] ss:$12 sps:$4 sm:$0xff]  }
 0x17a   :  { %v1612_v29 = vpop.f32.mrb[3].mxu0  ;;  %v1632_v30 = vpop.f32.mrb[3].mxu1  ;;  %v385_v31 = vadd.f32 %v384_v24, %v379_v25  ;;  %v1836_v24 = vld [vmem:[#allocation14 + $0x64] ss:$12 sps:$4 sm:$0xff]   ;;  %v1834_v25 = vld [vmem:[#allocation14 + $0x60] ss:$12 sps:$4 sm:$0xff]  }
 0x17b   :  { %v1840_v26 = vld [vmem:[#allocation14 + $0x7c] ss:$12 sps:$4 sm:$0xff]   ;;  %v1838_v27 = vld [vmem:[#allocation14 + $0x78] ss:$12 sps:$4 sm:$0xff]  }
 0x17c   :  { %v387_v32 = vsel %vm386_vm1, %v385_v31, -inf }
 0x17d   :  { %388 = vmax.xlane.f32.xlu0 %v387_v32  ;;  %v1844_v32 = vld [vmem:[#allocation14 + $0x94] ss:$12 sps:$4 sm:$0xff]  }
 0x20a   :  { %v389_v37 = vpop.xlane.xlu0 %388 }
 0x20b   :  { %v390_v38 = vsub.f32 %v385_v31, %v389_v37  ;;  %v1849_v37 = vld [vmem:[#allocation14 + $0xb0] ss:$12 sps:$4 sm:$0xff]  }
 0x20d   :  { %v391_v39 = vmul.f32 1.442695, %v390_v38  ;;  %v1852_v38 = vld [vmem:[#allocation16 + $0x4] ss:$12 sps:$4 sm:$0xff]  }
 0x20f   :  { %1890 = vpow2.f32 %v391_v39  ;;  %v2153_v39 = vmov 0  }
 0x219   :  { %v1891_v40 = vpop.eup %1890 }
 0x21a   :  { %v393_v41 = vsel %vm386_vm1, %v1891_v40, 0.0 }
 0x21b   :  { %394 = vadd.xlane.f32.xlu0 %v393_v41  ;;  %v713_v41 = vld [vmem:[%s2558_s9] sm:$0x1] }
 0x2a8   :  { %v395_v53 = vpop.xlane.xlu0 %394 }
 0x2a9   :  { %1892 = vrcp.f32 %v395_v53  ;;  %v1875_v53 = vld [vmem:[#allocation16 + $0x20] ss:$12 sps:$4 sm:$0xff]  }
 0x2b3   :  { %v1893_v54 = vpop.eup %1892 }
 0x2b4   :  { %v397_v55 = vmul.f32 %v1893_v54, %v1891_v40  ;;  %v1858_v54 = vld [vmem:[#allocation16 + $0x34] ss:$12 sps:$4 sm:$0xff]  }
 0x2b6   :  { %v399_v57 = vpack.c.bf16 %v397_v55, %v397_v55  ;;  %398 = vst [vmem:[#allocation20] sm:$0x1] %v397_v55  ;;  %v1856_v55 = vld [vmem:[#allocation16 + $0x30] ss:$12 sps:$4 sm:$0xff]  }
 0x2b8   :  { %1650 = vmatmul.mubr.bf16.vlgmr.msra.gmra.mrb[4].mxu0 %v399_v57  ;;  %v1861_v57 = vld [vmem:[#allocation16 + $0x4c] ss:$12 sps:$4 sm:$0xff]  }
 0x2b9   :  { %1674 = vmatpush3.bf16.msra.mxu0 %v1802_v56  ;;  %1689 = vmatprep.mubr.msk.bf16.mxu0 %vm2152_vm0, %v2151_v0  ;;  %v1876_v56 = vld [vmem:[#allocation16 + $0x38] ss:$12 sps:$4 sm:$0xff]  }
 0x2ba   :  { %1675 = vmatprep.subr.bf16.mxu0 %v2151_v0 }
 0x2bd   :  { %1676 = vmatpush3.bf16.msra.mxu0 %v1804_v58  ;;  %v1859_v58 = vld [vmem:[#allocation16 + $0x48] ss:$12 sps:$4 sm:$0xff]  }
 0x2be   :  { %1677 = vmatprep.subr.bf16.mxu0 %v2151_v0 }
 0x2c1   :  { %1678 = vmatpush3.bf16.msra.mxu0 %v1806_v59  ;;  %v1877_v59 = vld [vmem:[#allocation16 + $0x50] ss:$12 sps:$4 sm:$0xff]  }
 0x2c2   :  { %1679 = vmatprep.subr.bf16.mxu0 %v2151_v0 }
 0x2c5   :  { %1680 = vmatpush3.bf16.msra.mxu0 %v1808_v60  ;;  %v1864_v60 = vld [vmem:[#allocation16 + $0x64] ss:$12 sps:$4 sm:$0xff]  }
 0x2c6   :  { %1681 = vmatprep.subr.bf16.mxu0 %v2151_v0 }
 0x2c9   :  { %1682 = vmatpush3.bf16.msra.mxu0 %v1810_v61  ;;  %v1862_v61 = vld [vmem:[#allocation16 + $0x60] ss:$12 sps:$4 sm:$0xff]  }
 0x2ca   :  { %1683 = vmatprep.subr.bf16.mxu0 %v2151_v0 }
 0x2cd   :  { %1684 = vmatpush3.bf16.msra.mxu0 %v1812_v62  ;;  %v1878_v62 = vld [vmem:[#allocation16 + $0x68] ss:$12 sps:$4 sm:$0xff]  }
 0x2ce   :  { %1685 = vmatprep.subr.bf16.mxu0 %v2151_v0 }
 0x2d1   :  { %1686 = vmatpush3.bf16.msra.mxu0 %v1814_v63  ;;  %v1867_v63 = vld [vmem:[#allocation16 + $0x7c] ss:$12 sps:$4 sm:$0xff]  }
 0x2d2   :  { %1687 = vmatprep.subr.bf16.mxu0 %v2151_v0 }
 0x2d5   :  { %1688 = vmatpush3.bf16.msra.mxu0 %v1816_v1  ;;  %v1865_v1 = vld [vmem:[#allocation16 + $0x78] ss:$12 sps:$4 sm:$0xff]  }
 0x2d6   :  { %1693 = vmatprep.subr.bf16.mxu0 %v2151_v0 }
 0x2d8   :  { %1690 = vmatmul.mubr.bf16.vlgmr.msra.gmra.mrb[8].mxu0 %v2402_v20  ;;  %v1828_v20 = vld [vmem:[#allocation14 + $0x34] ss:$12 sps:$4 sm:$0xff]  }
 0x2d9   :  { %1709 = vmatprep.mubr.msk.bf16.mxu0 %vm2152_vm0, %v2151_v0  ;;  %1694 = vmatpush3.bf16.msra.mxu0 %v1821_v4  ;;  %v1868_v4 = vld [vmem:[#allocation16 + $0x90] ss:$12 sps:$4 sm:$0xff]  }
 0x2da   :  { %1695 = vmatprep.subr.bf16.mxu0 %v2151_v0 }
 0x2dd   :  { %1696 = vmatpush3.bf16.msra.mxu0 %v1825_v5  ;;  %v1880_v5 = vld [vmem:[#allocation16 + $0x98] ss:$12 sps:$4 sm:$0xff]  }
 0x2de   :  { %1697 = vmatprep.subr.bf16.mxu0 %v2151_v0 }
 0x2e1   :  { %1698 = vmatpush3.bf16.msra.mxu0 %v1829_v6  ;;  %v1874_v6 = vld [vmem:[#allocation16 + $0xac] ss:$12 sps:$4 sm:$0xff]  }
 0x2e2   :  { %1699 = vmatprep.subr.bf16.mxu0 %v2151_v0 }
 0x2e5   :  { %1700 = vmatpush3.bf16.msra.mxu0 %v1833_v7  ;;  %v1872_v7 = vld [vmem:[#allocation16 + $0xa8] ss:$12 sps:$4 sm:$0xff]  }
 0x2e6   :  { %1701 = vmatprep.subr.bf16.mxu0 %v2151_v0 }
 0x2e9   :  { %1702 = vmatpush3.bf16.msra.mxu0 %v1837_v8  ;;  %v1881_v8 = vld [vmem:[#allocation16 + $0xb0] ss:$12 sps:$4 sm:$0xff]  }
 0x2ea   :  { %1703 = vmatprep.subr.bf16.mxu0 %v2151_v0 }
 0x2ed   :  { %1704 = vmatpush3.bf16.msra.mxu0 %v1841_v9  ;;  %v1882_v9 = vld [vmem:[%s2563_s14] sm:$0xff]  }
 0x2ee   :  { %1705 = vmatprep.subr.bf16.mxu0 %v2151_v0 }
 0x2f1   :  { %1706 = vmatpush3.bf16.msra.mxu0 %v1845_v34 }
 0x2f2   :  { %1707 = vmatprep.subr.bf16.mxu0 %v2151_v0 }
 0x2f5   :  { %1708 = vmatpush3.bf16.msra.mxu0 %v1849_v37 }
 0x2f6   :  { %1713 = vmatprep.subr.bf16.mxu0 %v2151_v0 }
 0x38b   :  { %v498_v10 = vpop.f32.mrb[4].mxu0 }
 0x38c   :  { %v520_v12 = vpack.c.bf16 %v498_v10, %v498_v10  ;;  %v1651_v13 = vpop.f32.mrb[5].mxu0  ;;  %v1883_v10 = vld [vmem:[%s2563_s14 + $0x8] sm:$0xff]  }
 0x38d   :  { %v501_v15 = vpop.f32.mrb[6].mxu0  ;;  %v1887_v13 = vld [vmem:[%s2563_s14 + $0x28] sm:$0xff]  }
 0x38e   :  { %v1652_v16 = vpop.f32.mrb[7].mxu0  ;;  %1670 = vmatmul.mubr.bf16.vlgmr.msra.gmra.mrb[4].mxu1 %v520_v12  ;;  %v1886_v12 = vld [vmem:[%s2563_s14 + $0x20] sm:$0xff]   ;;  %v1889_v15 = vld [vmem:[%s2563_s14 + $0x38] sm:$0xff]  }
 0x38f   :  { %895 = vmatpush1.bf16.msra.mxu1 %v1818_v11  ;;  %926 = vmatprep.mubr.bf16.mxu1 %v2153_v39  ;;  %v1885_v11 = vld [vmem:[%s2563_s14 + $0x18] sm:$0xff]  }
 0x390   :  { %896 = vmatprep.subr.bf16.mxu1 %v1824_v14  ;;  %v1888_v14 = vld [vmem:[%s2563_s14 + $0x30] sm:$0xff]  }
 0x393   :  { %897 = vmatpush1.bf16.msra.mxu1 %v1822_v18 }
 0x394   :  { %898 = vmatprep.subr.bf16.mxu1 %v1828_v20 }
 0x397   :  { %899 = vmatpush1.bf16.msra.mxu1 %v1826_v21 }
 0x398   :  { %900 = vmatprep.subr.bf16.mxu1 %v1832_v22  ;;  %v879_v22 = vlaneseq }
 0x39b   :  { %901 = vmatpush1.bf16.msra.mxu1 %v1830_v23  ;;  %v880_v23 = vshrl.u32 %v879_v22, 7 }
 0x39c   :  { %902 = vmatprep.subr.bf16.mxu1 %v1836_v24 }
 0x39d   :  { %v881_v24 = vsub.s32 0, %v880_v23 }
 0x39f   :  { %903 = vmatpush1.bf16.msra.mxu1 %v1834_v25  ;;  %v1007_v25 = vld [vmem:[%s2562_s13] sm:$0x7] }
 0x3a0   :  { %904 = vmatprep.subr.bf16.mxu1 %v1840_v26  ;;  %v749_v26 = vld [vmem:[%s2560_s11] sm:$0x7] }
 0x3a3   :  { %905 = vmatpush1.bf16.msra.mxu1 %v1838_v27  ;;  %v885_v27 = vsub.s32 1, %v880_v23 }
 0x3a4   :  { %906 = vmatprep.subr.bf16.mxu1 %v1844_v32 }
 0x3a7   :  { %907 = vmatpush1.bf16.msra.mxu1 %v1842_v33 }
 0x3a8   :  { %908 = vmatprep.subr.bf16.mxu1 %v1848_v35 }
 0x3ab   :  { %v707_v28 = vpop.f32.mrb[8].mxu0  ;;  %909 = vmatpush1.bf16.msra.mxu1 %v1846_v36 }
 0x3ac   :  { %v1691_v29 = vpop.f32.mrb[9].mxu0  ;;  %1152 = vmatprep.subr.bf16.mxu1 %v1852_v38 }
 0x3ad   :  { %v710_v30 = vpop.f32.mrb[10].mxu0  ;;  %v1140_v29 = vrot.slane %v1007_v25, %v881_v24 }
 0x3ae   :  { %v1692_v31 = vpop.f32.mrb[11].mxu0  ;;  %v1144_v30 = vrot.slane %v1007_v25, %v885_v27 }
 0x461   :  { %v619_v40 = vpop.f32.mrb[4].mxu1 }
 0x462   :  { %v708_v42 = vadd.f32 %v707_v28, %v619_v40  ;;  %v1671_v43 = vpop.f32.mrb[5].mxu1  ;;  %v882_v28 = vrot.slane %v749_v26, %v881_v24 }
 0x463   :  { %v622_v44 = vpop.f32.mrb[6].mxu1 }
 0x464   :  { %v714_v45 = vadd.f32 %v713_v41, %v708_v42  ;;  %v1672_v46 = vpop.f32.mrb[7].mxu1  ;;  %v1753_v31 = vadd.f32 %v1140_v29, %v882_v28 }
 0x466   :  { %v715_v47 = vmax.f32 %v714_v45, 0.0 }
 0x468   :  { %v716_v50 = vpack.c.bf16 %v715_v47, %v715_v47  ;;  %v889_v47 = vsub.s32 2, %v880_v23 }
 0x46a   :  { %927 = vmatmul.mubr.bf16.vlgmr.msra.gmra.mrb[8].mxu1 %v716_v50  ;;  %1710 = vmatmul.mubr.bf16.vlgmr.msra.gmra.mrb[12].mxu0 %v716_v50  ;;  %v890_v50 = vrot.slane %v749_v26, %v889_v47 }
 0x46b   :  { %1153 = vmatpush1.bf16.msra.mxu1 %v1850_v48  ;;  %1714 = vmatpush3.bf16.msra.mxu0 %v1871_v49  ;;  %v1148_v48 = vrot.slane %v1007_v25, %v889_v47 }
 0x46c   :  { %1154 = vmatprep.subr.bf16.mxu1 %v1855_v51  ;;  %1715 = vmatprep.subr.bf16.mxu0 %v2151_v0 }
 0x46d   :  { %1184 = vmatprep.mubr.bf16.mxu1 %v2153_v39  ;;  %1729 = vmatprep.mubr.msk.bf16.mxu0 %vm2152_vm0, %v2151_v0 }
 0x46f   :  { %1155 = vmatpush1.bf16.msra.mxu1 %v1853_v52  ;;  %1716 = vmatpush3.bf16.msra.mxu0 %v1875_v53 }
 0x470   :  { %1156 = vmatprep.subr.bf16.mxu1 %v1858_v54  ;;  %1717 = vmatprep.subr.bf16.mxu0 %v2151_v0 }
 0x473   :  { %1157 = vmatpush1.bf16.msra.mxu1 %v1856_v55  ;;  %1718 = vmatpush3.bf16.msra.mxu0 %v1876_v56 }
 0x474   :  { %1158 = vmatprep.subr.bf16.mxu1 %v1861_v57  ;;  %1719 = vmatprep.subr.bf16.mxu0 %v2151_v0 }
 0x477   :  { %1159 = vmatpush1.bf16.msra.mxu1 %v1859_v58  ;;  %1720 = vmatpush3.bf16.msra.mxu0 %v1877_v59 }
 0x478   :  { %1160 = vmatprep.subr.bf16.mxu1 %v1864_v60  ;;  %1721 = vmatprep.subr.bf16.mxu0 %v2151_v0 }
 0x47b   :  { %1161 = vmatpush1.bf16.msra.mxu1 %v1862_v61  ;;  %1722 = vmatpush3.bf16.msra.mxu0 %v1878_v62 }
 0x47c   :  { %1162 = vmatprep.subr.bf16.mxu1 %v1867_v63  ;;  %1723 = vmatprep.subr.bf16.mxu0 %v2151_v0 }
 0x47f   :  { %1163 = vmatpush1.bf16.msra.mxu1 %v1865_v1  ;;  %1724 = vmatpush3.bf16.msra.mxu0 %v1879_v2  ;;  %v1273_v1 = vld [vmem:[%s2564_s15] sm:$0x1] }
 0x480   :  { %1164 = vmatprep.subr.bf16.mxu1 %v1870_v3  ;;  %1725 = vmatprep.subr.bf16.mxu0 %v2151_v0 }
 0x483   :  { %1165 = vmatpush1.bf16.msra.mxu1 %v1868_v4  ;;  %1726 = vmatpush3.bf16.msra.mxu0 %v1880_v5 }
 0x484   :  { %1166 = vmatprep.subr.bf16.mxu1 %v1874_v6  ;;  %1727 = vmatprep.subr.bf16.mxu0 %v2151_v0 }
 0x487   :  { %1167 = vmatpush1.bf16.msra.mxu1 %v1872_v7  ;;  %1728 = vmatpush3.bf16.msra.mxu0 %v1881_v8 }
 0x488   :  { %1733 = vmatprep.subr.bf16.mxu1 %v2151_v0 }
 0x48a   :  { %1185 = vmatmul.mubr.bf16.vlgmr.msra.gmra.mrb[8].mxu1 %v2400_v19  ;;  %1730 = vmatmul.mubr.bf16.vlgmr.msra.gmra.mrb[16].mxu0 %v2400_v19  ;;  %v1884_v19 = vld [vmem:[%s2563_s14 + $0x10] sm:$0xff]   ;;  %s2154_s14 = smov [#allocation18]  }
 0x48b   :  { %1749 = vmatprep.mubr.msk.bf16.mxu1 %vm2152_vm0, %v2151_v0  ;;  %1734 = vmatpush3.bf16.msra.mxu1 %v1882_v9  ;;  %s1391_s3 = sshll.u32 %s2154_s14, 4  ;;  %s1392_s3 = int_to_ptr.vmem [resolvable:$true] %s1391_s3 }
 0x48c   :  { %1735 = vmatprep.subr.bf16.mxu1 %v2151_v0  ;;  %s2062_s15 = scalar_lea.vmem %s1392_s3, 16  ;;  %s2066_s23 = scalar_lea.vmem %s1392_s3, 32 }
 0x48d   :  { %p2063_p1 = scmp.ne.s32.totalorder %s1392_s3, %s2062_s15  ;;  %p2067_p2 = scmp.lt.s32.totalorder %s1392_s3, %s1392_s3 }
 0x48e   :  { %p2068_p3 = scmp.lt.s32.totalorder %s2066_s23, %s2062_s15 }
 0x48f   :  { %1736 = vmatpush3.bf16.msra.mxu1 %v1883_v10 }
 0x490   :  { %1737 = vmatprep.subr.bf16.mxu1 %v2151_v0  ;;  %p2069_p4 = por %p2068_p3, %p2067_p2 }
 0x492   :  { %p2070_p5 = pnand %p2069_p4, %p2063_p1 }
 0x493   :  { %1738 = vmatpush3.bf16.msra.mxu1 %v1884_v19 }
 0x494   :  { %1739 = vmatprep.subr.bf16.mxu1 %v2151_v0 }
 0x497   :  { %1740 = vmatpush3.bf16.msra.mxu1 %v1885_v11 }
 0x498   :  { %1741 = vmatprep.subr.bf16.mxu1 %v2151_v0 }
 0x49b   :  { %1742 = vmatpush3.bf16.msra.mxu1 %v1886_v12 }
 0x49c   :  { %1743 = vmatprep.subr.bf16.mxu1 %v2151_v0 }
 0x49f   :  { %1744 = vmatpush3.bf16.msra.mxu1 %v1887_v13 }
 0x4a0   :  { %1745 = vmatprep.subr.bf16.mxu1 %v2151_v0 }
 0x4a3   :  { %1746 = vmatpush3.bf16.msra.mxu1 %v1888_v14 }
 0x4a4   :  { %1747 = vmatprep.subr.bf16.mxu1 %v2151_v0  ;;  %v886_v0 = vrot.slane %v749_v26, %v885_v27 }
 0x4a6   :  { %v1755_v33 = vadd.f32 %v1144_v30, %v886_v0 }
 0x4a7   :  { %1748 = vmatpush3.bf16.msra.mxu1 %v1889_v15 }
 0x53d   :  { %v969_v16 = vpop.f32.mrb[12].mxu0 }
 0x53e   :  { %v1711_v18 = vpop.f32.mrb[13].mxu0  ;;  %v970_v54 = vadd.f32 %v969_v16, %v890_v50 }
 0x53f   :  { %v972_v20 = vpop.f32.mrb[14].mxu0 }
 0x540   :  { %v1712_v21 = vpop.f32.mrb[15].mxu0 }
 0x55d   :  { %v1186_v32 = vpop.f32.mrb[8].mxu1  ;;  %v1227_v34 = vpop.f32.mrb[16].mxu0 }
 0x55e   :  { %v1754_v35 = vadd.f32 %v1753_v31, %v1186_v32  ;;  %v1188_v36 = vpop.f32.mrb[9].mxu1  ;;  %v1731_v37 = vpop.f32.mrb[17].mxu0  ;;  %v1228_v52 = vadd.f32 %v1227_v34, %v1148_v48 }
 0x55f   :  { %v1190_v38 = vpop.f32.mrb[10].mxu1  ;;  %v1230_v39 = vpop.f32.mrb[18].mxu0  ;;  %v1756_v43 = vadd.f32 %v1755_v33, %v1188_v36 }
 0x560   :  { %v1511_v40 = vmul.f32 -1.442695, %v1754_v35  ;;  %v1191_v41 = vpop.f32.mrb[11].mxu1  ;;  %v1732_v42 = vpop.f32.mrb[19].mxu0 }
 0x561   :  { %v1512_v44 = vmul.f32 -1.442695, %v1756_v43 }
 0x562   :  { %1894 = vpow2.f32 %v1511_v40 }
 0x563   :  { %1896 = vpow2.f32 %v1512_v44 }
 0x56c   :  { %v1895_v45 = vpop.eup %1894 }
 0x56d   :  { %v1237_v46 = vadd.f32 1.0, %v1895_v45  ;;  %v1897_v49 = vpop.eup %1896 }
 0x56e   :  { %v1244_v51 = vadd.f32 1.0, %v1897_v49 }
 0x56f   :  { %1898 = vrcp.f32 %v1237_v46 }
 0x570   :  { %1900 = vrcp.f32 %v1244_v51 }
 0x579   :  { %v1899_v53 = vpop.eup %1898 }
 0x57a   :  { %v1247_v55 = vmul.f32 %v1899_v53, %v1228_v52  ;;  %v1901_v57 = vpop.eup %1900 }
 0x57b   :  { %v1250_v58 = vsub.f32 1.0, %v1901_v57  ;;  %v1252_v61 = vmul.f32 %v1901_v57, %v2391_v17 }
 0x57c   :  { %v1248_v56 = vadd.f32 %v1247_v55, %v970_v54 }
 0x57e   :  { %1902 = vtanh.f32 %v1248_v56 }
 0x588   :  { %v1903_v59 = vpop.eup %1902 }
 0x589   :  { %v1251_v60 = vmul.f32 %v1903_v59, %v1250_v58 }
 0x58b   :  { %v1253_v62 = vadd.f32 %v1252_v61, %v1251_v60 }
 0x58d   :  { %1254 = vst [vmem:[#allocation2] sm:$0x1] %v1253_v62  ;;  %v1256_v63 = vpack.c.bf16 %v1253_v62, %v1253_v62  ;;  %1255 = vst [vmem:[#allocation18] sm:$0x1] %v1253_v62 }
 0x58f   :  { %1750 = vmatmul.mubr.bf16.vlgmr.msra.gmra.mrb[12].mxu1 %v1256_v63 }
 0x662   :  { %v1356_v2 = vpop.f32.mrb[12].mxu1 }
 0x663   :  { %v1357_v3 = vadd.f32 %v1356_v2, %v1273_v1  ;;  %v1751_v4 = vpop.f32.mrb[13].mxu1 }
 0x664   :  { %v1359_v5 = vpop.f32.mrb[14].mxu1 }
 0x665   :  { %v1752_v6 = vpop.f32.mrb[15].mxu1  ;;  %v1362_v7 = vsel %vm386_vm1, %v1357_v3, -inf }
 0x666   :  { %1363 = vmax.xlane.f32.xlu1 %v1362_v7 }
 0x6f3   :  { %v1364_v8 = vpop.xlane.xlu1 %1363 }
 0x6f4   :  { %v1365_v9 = vsub.f32 %v1357_v3, %v1364_v8 }
 0x6f6   :  { %v1366_v17 = vmul.f32 1.442695, %v1365_v9 }
 0x6f8   :  { %1904 = vpow2.f32 %v1366_v17 }
 0x702   :  { %v1905_v10 = vpop.eup %1904 }
 0x703   :  { %v1368_v19 = vsel %vm386_vm1, %v1905_v10, 0.0 }
 0x704   :  { %1369 = vadd.xlane.f32.xlu1 %v1368_v19 }
 0x705   :  { %2073 = shalt.err (!%p2070_p5)
}
 0x706   :  { %s2074_s9 = scalar_lea.hbm %s2566_s17, 16 }
 0x707   :  { %p2075_p6 = scmp.ne.s32.totalorder %s2566_s17, %s2074_s9  ;;  %p2078_p7 = scmp.lt.u32.totalorder %s2074_s9, %s2566_s17 }
 0x709   :  { %p2080_p8 = pnand %p2078_p7, %p2075_p6 }
 0x70b   :  { %2083 = shalt.err (!%p2080_p8)
}
 0x70c   :  { %1394 = dma.vmem_to_hbm [thread:$0]  %s1392_s3, 16, %s2566_s17, [#allocation19]  }
 0x70d   :  { %s2155_s25 = smov [#allocation20]  }
 0x70e   :  { %s1401_s12 = sshll.u32 %s2155_s25, 4  ;;  %s1402_s12 = int_to_ptr.vmem [resolvable:$true] %s1401_s12 }
 0x70f   :  { %s2084_s7 = scalar_lea.vmem %s1402_s12, 16  ;;  %s2088_s30 = scalar_lea.vmem %s1402_s12, 32 }
 0x710   :  { %p2085_p9 = scmp.ne.s32.totalorder %s1402_s12, %s2084_s7  ;;  %p2089_p10 = scmp.lt.s32.totalorder %s1402_s12, %s1402_s12 }
 0x711   :  { %p2090_p11 = scmp.lt.s32.totalorder %s2088_s30, %s2084_s7 }
 0x713   :  { %p2091_p12 = por %p2090_p11, %p2089_p10 }
 0x715   :  { %p2092_p13 = pnand %p2091_p12, %p2085_p9 }
 0x717   :  { %2095 = shalt.err (!%p2092_p13)
}
 0x718   :  { %s2096_s4 = scalar_lea.hbm %s2567_s18, 16 }
 0x719   :  { %p2097_p0 = scmp.ne.s32.totalorder %s2567_s18, %s2096_s4  ;;  %p2100_p1 = scmp.lt.u32.totalorder %s2096_s4, %s2567_s18 }
 0x71b   :  { %p2102_p2 = pnand %p2100_p1, %p2097_p0 }
 0x71d   :  { %2105 = shalt.err (!%p2102_p2)
}
 0x71e   :  { %1404 = dma.vmem_to_hbm [thread:$0]  %s1402_s12, 16, %s2567_s18, [#allocation19]  }
 0x71f   :  { %s2156_s21 = smov [#allocation17]  }
 0x720   :  { %s1381_s11 = sshll.u32 %s2156_s21, 4  ;;  %s1382_s11 = int_to_ptr.vmem [resolvable:$true] %s1381_s11 }
 0x721   :  { %s2106_s13 = scalar_lea.vmem %s1382_s11, 16  ;;  %s2110_s14 = scalar_lea.vmem %s1382_s11, 32 }
 0x722   :  { %p2107_p3 = scmp.ne.s32.totalorder %s1382_s11, %s2106_s13  ;;  %p2111_p4 = scmp.lt.s32.totalorder %s1382_s11, %s1382_s11 }
 0x723   :  { %p2112_p5 = scmp.lt.s32.totalorder %s2110_s14, %s2106_s13 }
 0x725   :  { %p2113_p6 = por %p2112_p5, %p2111_p4 }
 0x727   :  { %p2114_p7 = pnand %p2113_p6, %p2107_p3 }
 0x791   :  { %v1370_v11 = vpop.xlane.xlu1 %1369 }
 0x792   :  { %1906 = vlog2.f32 %v1370_v11 }
 0x79c   :  { %v1907_v12 = vpop.eup %1906 }
 0x79d   :  { %v1372_v13 = vmul.f32 0.6931472, %v1907_v12 }
 0x79f   :  { %v1373_v14 = vsub.f32 %v1365_v9, %v1372_v13 }
 0x7a1   :  { %1374 = vst [vmem:[#allocation17] sm:$0x1] %v1373_v14 }
 0x7a2   :  { %2117 = shalt.err (!%p2114_p7)
}
 0x7a3   :  { %s2118_s18 = scalar_lea.hbm %s2565_s16, 16 }
 0x7a4   :  { %p2119_p8 = scmp.ne.s32.totalorder %s2565_s16, %s2118_s18  ;;  %p2122_p9 = scmp.lt.u32.totalorder %s2118_s18, %s2565_s16 }
 0x7a6   :  { %p2124_p10 = pnand %p2122_p9, %p2119_p8 }
 0x7a8   :  { %2127 = shalt.err (!%p2124_p10)
}
 0x7a9   :  { %1384 = dma.vmem_to_hbm [thread:$0]  %s1382_s11, 16, %s2565_s16, [#allocation7]  }
 0x7aa   :  { %2136 = dma.done.wait [#allocation7], 16  }
 0x7ab   :  { %2137 = vsyncadd [#allocation7], 4294967280 }
 0x7ac   :  { %2138 = dma.done.wait [#allocation19], 32  }
 0x7ad   :  { %2139 = vsyncadd [#allocation19], 4294967264 }
 0x7ae   :  { %1414 = vsyncpa [#allocation6], 1 }
 0x7af   :  { %1415 = vsyncpa [#allocation9], 1 }
 0x7b0   :  { %1416 = vsyncpa [#allocation12], 1 }
 0x7b1   :  { %1417 = vsyncpa [#allocation15], 1 }
 0x7b2   :  { %1418 = vsyncpa [#allocation7], 1 }
 0x7b3   :  { %1419 = vsyncpa [#allocation19], 1 }

</bundles_post_ra>
